<compile_context>
chip_gen: v7x
topology: tpu7x:2x2x1
jax: 0.10.0
libtpu: 0.0.40
codegen_flags: <defaults>
</compile_context>

<pallas_src>
import functools

import jax
import jax.numpy as jnp
from jax.experimental import pallas as pl
from jax.experimental.pallas import tpu as pltpu

# Cast matmul operands to bf16 (2x MXU throughput + half the HBM/VMEM traffic
# on v6e/v7x).  Off by default to keep f32 parity with PyTorch.
USE_BF16_MATMUL = False

LANE = 128      # lane width: channel-padding target (lane-dense, MXU-native N/K)
_EPS = 1e-5


def _round_up(x, m):
    return (x + m - 1) // m * m


def _pick_tk(k):
    """Largest 128-multiple <= 512 that divides k (k is a multiple of 128)."""
    nk = k // LANE
    for m in (4, 3, 2, 1):
        if nk % m == 0:
            return LANE * m
    return LANE


def _pick_row_tile(m_pad, c, max_bytes=2 << 20):
    """Row tile for elementwise kernels (m_pad is a multiple of 128)."""
    tm = 512
    while tm > LANE and (m_pad % tm != 0 or tm * c * 4 > max_bytes):
        tm //= 2
    return tm


# ----------------------------------------------------------------------------
# Pallas kernels
# ----------------------------------------------------------------------------
def _matmul_stats_kernel(x_ref, w_ref, o_ref, stats_ref, acc_ref):
    """Tiled MXU matmul with f32 VMEM accumulator.  On the last K step it also
    writes per-channel [sum; sum_sq] of this M-tile (BatchNorm batch stats)."""
    k = pl.program_id(2)

    @pl.when(k == 0)
    def _():
        acc_ref[...] = jnp.zeros_like(acc_ref)

    acc_ref[...] += jnp.dot(x_ref[...], w_ref[...],
                            preferred_element_type=jnp.float32)

    @pl.when(k == pl.num_programs(2) - 1)
    def _():
        acc = acc_ref[...]
        o_ref[...] = acc.astype(o_ref.dtype)
        csum = jnp.sum(acc, axis=0, keepdims=True)             # (1, tn)
        csq = jnp.sum(acc * acc, axis=0, keepdims=True)        # (1, tn)
        # Full-block (unmasked) store of the (1, 2, tn) stats tile.
        stats_ref[...] = jnp.concatenate([csum, csq], axis=0)[None]


def pallas_matmul_stats(x, w):
    """(M, K) @ (K, N) -> (out (Mpad, N) f32, stats (Mtiles, 2, N) f32).

    K and N must be multiples of 128 (guaranteed by channel padding).  M is
    zero-padded to a multiple of 128; zero rows contribute nothing to stats.
    """
    m, k = x.shape
    k2, n = w.shape
    assert k == k2 and k % LANE == 0 and n % LANE == 0
    m_pad = _round_up(m, LANE)
    if m_pad != m:
        x = jnp.pad(x, ((0, m_pad - m), (0, 0)))
    if USE_BF16_MATMUL:
        x = x.astype(jnp.bfloat16)
        w = w.astype(jnp.bfloat16)
    tm = 256 if m_pad % 256 == 0 else 128
    tn = 256 if n % 256 == 0 else 128
    tk = _pick_tk(k)
    grid = (m_pad // tm, n // tn, k // tk)
    out, stats = pl.pallas_call(
        _matmul_stats_kernel,
        out_shape=(jax.ShapeDtypeStruct((m_pad, n), jnp.float32),
                   jax.ShapeDtypeStruct((grid[0], 2, n), jnp.float32)),
        grid_spec=pltpu.PrefetchScalarGridSpec(
            num_scalar_prefetch=0,
            grid=grid,
            in_specs=[pl.BlockSpec((tm, tk), lambda i, j, kk: (i, kk)),
                      pl.BlockSpec((tk, tn), lambda i, j, kk: (kk, j))],
            out_specs=(pl.BlockSpec((tm, tn), lambda i, j, kk: (i, j)),
                       pl.BlockSpec((1, 2, tn), lambda i, j, kk: (i, 0, j))),
            scratch_shapes=[pltpu.VMEM((tm, tn), jnp.float32)]),
        compiler_params=pltpu.CompilerParams(
            dimension_semantics=("parallel", "parallel", "arbitrary")),
    )(x, w)
    return out, stats


def _bn_apply_kernel(x_ref, s_ref, t_ref, o_ref, *, relu):
    y = x_ref[...] * s_ref[...] + t_ref[...]
    if relu:
        y = jnp.maximum(y, 0.0)
    o_ref[...] = y


def _bn_residual_relu_kernel(x_ref, s_ref, t_ref, sc_ref, ssc_ref, tsc_ref, o_ref):
    """Fused: BN2-apply + shortcut-BN-apply + residual add + ReLU."""
    main = x_ref[...] * s_ref[...] + t_ref[...]
    short = sc_ref[...] * ssc_ref[...] + tsc_ref[...]
    o_ref[...] = jnp.maximum(main + short, 0.0)


def pallas_bn_apply(x2d, scale, shift, *, relu):
    m, c = x2d.shape
    tm = _pick_row_tile(m, c)
    kern = functools.partial(_bn_apply_kernel, relu=relu)
    return pl.pallas_call(
        kern,
        out_shape=jax.ShapeDtypeStruct((m, c), jnp.float32),
        grid_spec=pltpu.PrefetchScalarGridSpec(
            num_scalar_prefetch=0,
            grid=(m // tm,),
            in_specs=[pl.BlockSpec((tm, c), lambda i: (i, 0)),
                      pl.BlockSpec((1, c), lambda i: (0, 0)),
                      pl.BlockSpec((1, c), lambda i: (0, 0))],
            out_specs=pl.BlockSpec((tm, c), lambda i: (i, 0))),
        compiler_params=pltpu.CompilerParams(dimension_semantics=("parallel",)),
    )(x2d, scale, shift)


def pallas_bn_residual_relu(x2d, scale, shift, sc2d, sc_scale, sc_shift):
    m, c = x2d.shape
    tm = _pick_row_tile(m, c)
    return pl.pallas_call(
        _bn_residual_relu_kernel,
        out_shape=jax.ShapeDtypeStruct((m, c), jnp.float32),
        grid_spec=pltpu.PrefetchScalarGridSpec(
            num_scalar_prefetch=0,
            grid=(m // tm,),
            in_specs=[pl.BlockSpec((tm, c), lambda i: (i, 0)),
                      pl.BlockSpec((1, c), lambda i: (0, 0)),
                      pl.BlockSpec((1, c), lambda i: (0, 0)),
                      pl.BlockSpec((tm, c), lambda i: (i, 0)),
                      pl.BlockSpec((1, c), lambda i: (0, 0)),
                      pl.BlockSpec((1, c), lambda i: (0, 0))],
            out_specs=pl.BlockSpec((tm, c), lambda i: (i, 0))),
        compiler_params=pltpu.CompilerParams(dimension_semantics=("parallel",)),
    )(x2d, scale, shift, sc2d, sc_scale, sc_shift)


# ----------------------------------------------------------------------------
# BatchNorm folding + conv glue (im2col is XLA data movement; matmul is Pallas)
# ----------------------------------------------------------------------------
def bn_scale_shift(stats, rows, gamma, beta, eps=_EPS):
    """Fold training-mode BatchNorm (biased batch variance over N,H,W) into a
    per-channel scale/shift.  Tiny per-channel math; f32 accumulation."""
    s = jnp.sum(stats, axis=0)                 # (2, C): [sum; sum_sq]
    mean = s[0:1] / rows                       # (1, C)
    var = s[1:2] / rows - mean * mean          # biased variance (one-pass)
    scale = gamma * jax.lax.rsqrt(var + eps)
    shift = beta - mean * scale
    return scale, shift


def conv2d_matmul_stats(x_nhwc, wmat, *, ksize, stride):
    """Bias-free NHWC conv (padding=1 for 3x3, 0 for 1x1) as im2col matmul.
    Channels of x_nhwc are already zero-padded to a multiple of 128."""
    n, h, w, c = x_nhwc.shape
    if ksize == 1:
        xs = x_nhwc[:, ::stride, ::stride, :]
        ho, wo = xs.shape[1], xs.shape[2]
        cols = xs.reshape(n * ho * wo, c)
    else:
        # TODO(synk): move im2col into the matmul kernel (grid axis over the 9
        # taps reading shifted windows of the padded NHWC input) to avoid
        # materializing this 9x slab in HBM; kept as XLA data movement for now.
        xp = jnp.pad(x_nhwc, ((0, 0), (1, 1), (1, 1), (0, 0)))
        ho = (h + 2 - ksize) // stride + 1
        wo = (w + 2 - ksize) // stride + 1
        patches = [xp[:, dh:dh + stride * (ho - 1) + 1:stride,
                      dw:dw + stride * (wo - 1) + 1:stride, :]
                   for dh in range(ksize) for dw in range(ksize)]
        cols = jnp.concatenate(patches, axis=-1).reshape(
            n * ho * wo, ksize * ksize * c)
    m = cols.shape[0]
    out, stats = pallas_matmul_stats(cols, wmat)
    return out, stats, (n, ho, wo), m


# ----------------------------------------------------------------------------
# standard_block / stack_layer forward (mirrors the PyTorch module)
# ----------------------------------------------------------------------------
def standard_block_fwd(x_nhwc, p):
    """x_nhwc: (N, H, W, Cin_pad) — real channels first, lane padding is zero."""
    cin_pad = x_nhwc.shape[-1]

    # conv1 (3x3, stride s) + batch stats -> BN1 + ReLU
    c1, st1, (n, ho, wo), m = conv2d_matmul_stats(
        x_nhwc, p["conv1_wmat"], ksize=3, stride=p["stride"])
    cpad = c1.shape[1]
    s1, t1 = bn_scale_shift(st1, float(m), p["bn1_g"], p["bn1_b"])
    b1 = pallas_bn_apply(c1, s1, t1, relu=True)
    b1_img = b1[:m].reshape(n, ho, wo, cpad)

    # conv2 (3x3, stride 1) + batch stats (BN2 applied in the fused epilogue)
    c2, st2, _, m2 = conv2d_matmul_stats(b1_img, p["conv2_wmat"], ksize=3, stride=1)
    s2, t2 = bn_scale_shift(st2, float(m2), p["bn2_g"], p["bn2_b"])

    # shortcut: 1x1 conv + BN, or identity
    if p["has_proj"]:
        sc, stp, _, mp = conv2d_matmul_stats(
            x_nhwc, p["proj_wmat"], ksize=1, stride=p["stride"])
        ssc, tsc = bn_scale_shift(stp, float(mp), p["proj_bn_g"], p["proj_bn_b"])
        sc2d = sc
    else:
        if cin_pad != cpad or p["cin"] != p["cout"]:
            # PyTorch would raise on the shape-mismatched `bn2 += inputs`.
            raise ValueError("identity shortcut requires matching channel count")
        sc2d = x_nhwc.reshape(-1, cpad)
        if sc2d.shape[0] != c2.shape[0]:
            sc2d = jnp.pad(sc2d, ((0, c2.shape[0] - sc2d.shape[0]), (0, 0)))
        ssc = jnp.ones((1, cpad), jnp.float32)
        tsc = jnp.zeros((1, cpad), jnp.float32)

    # fused epilogue: bn2(conv2) + shortcut -> ReLU  (one HBM round trip)
    out = pallas_bn_residual_relu(c2, s2, t2, sc2d, ssc, tsc)
    return out[:m2].reshape(n, ho, wo, cpad)


def _prep_conv_weight(w_oihw, cin_pad, cout_pad):
    """PyTorch (Cout, Cin, kh, kw) -> lane-padded (kh*kw*Cin_pad, Cout_pad)
    matching the (dh, dw, cin) im2col column order.  Hoisted to init time."""
    cout, cin, kh, kw = w_oihw.shape
    w = jnp.transpose(w_oihw, (2, 3, 1, 0))                    # (kh, kw, cin, cout)
    w = jnp.pad(w, ((0, 0), (0, 0), (0, cin_pad - cin), (0, cout_pad - cout)))
    return w.reshape(kh * kw * cin_pad, cout_pad)


def _pad_vec(v, cpad):
    # Padded channels get gamma=0 / beta=0 so they stay exactly zero end-to-end.
    return jnp.pad(v, (0, cpad - v.shape[0])).reshape(1, cpad)


def init_stack_layer(key, filters, strides, resnet_size, first_num_filters):
    """Deterministic params matching stack_layer(block_fn=standard_block)."""
    filters_out = filters                    # standard_block: filters_out == filters
    fnf = first_num_filters
    blocks = []
    for i in range(resnet_size):
        if strides != 1 and i == 0:
            s, has_proj = strides, True      # Sequential() shortcut -> 1x1 conv + BN
        else:
            s, has_proj = 1, False           # None shortcut, stride 1 -> identity
        key, *ks = jax.random.split(key, 7)
        cin, cout = fnf, filters_out
        cin_pad = _round_up(max(cin, 1), LANE)
        cout_pad = _round_up(max(cout, 1), LANE)
        conv1_w = 0.1 * jax.random.normal(ks[0], (cout, cin, 3, 3), jnp.float32)
        conv2_w = 0.1 * jax.random.normal(ks[3], (cout, cout, 3, 3), jnp.float32)
        bn1_g = 1.0 + 0.1 * jax.random.normal(ks[1], (cout,), jnp.float32)
        bn1_b = 0.1 * jax.random.normal(ks[2], (cout,), jnp.float32)
        bn2_g = 1.0 + 0.1 * jax.random.normal(ks[4], (cout,), jnp.float32)
        bn2_b = 0.1 * jax.random.normal(ks[5], (cout,), jnp.float32)
        p = {
            "stride": s,
            "has_proj": has_proj,
            "cin": cin, "cout": cout,
            "cin_pad": cin_pad, "cout_pad": cout_pad,
            "conv1_wmat": _prep_conv_weight(conv1_w, cin_pad, cout_pad),
            "conv2_wmat": _prep_conv_weight(conv2_w, cout_pad, cout_pad),
            "bn1_g": _pad_vec(bn1_g, cout_pad), "bn1_b": _pad_vec(bn1_b, cout_pad),
            "bn2_g": _pad_vec(bn2_g, cout_pad), "bn2_b": _pad_vec(bn2_b, cout_pad),
            # raw copies kept only for the pure-JAX reference check in __main__
            "conv1_w_raw": conv1_w, "conv2_w_raw": conv2_w,
            "bn1_g_raw": bn1_g, "bn1_b_raw": bn1_b,
            "bn2_g_raw": bn2_g, "bn2_b_raw": bn2_b,
        }
        if has_proj:
            key, k1, k2, k3 = jax.random.split(key, 4)
            proj_w = 0.1 * jax.random.normal(k1, (cout, cin, 1, 1), jnp.float32)
            pg = 1.0 + 0.1 * jax.random.normal(k2, (cout,), jnp.float32)
            pb = 0.1 * jax.random.normal(k3, (cout,), jnp.float32)
            p["proj_wmat"] = _prep_conv_weight(proj_w, cin_pad, cout_pad)
            p["proj_bn_g"] = _pad_vec(pg, cout_pad)
            p["proj_bn_b"] = _pad_vec(pb, cout_pad)
            p["proj_w_raw"] = proj_w
            p["proj_bn_g_raw"] = pg
            p["proj_bn_b_raw"] = pb
        blocks.append(p)
        fnf = filters_out                    # "first_num_filters = filters_out"
    return blocks


def stack_layer_fwd(x_nhwc, blocks):
    cpad0 = blocks[0]["cin_pad"]
    x = jnp.pad(x_nhwc, ((0, 0), (0, 0), (0, 0), (0, cpad0 - x_nhwc.shape[-1])))
    for p in blocks:
        x = standard_block_fwd(x, p)
    return x[..., :blocks[-1]["cout"]]       # drop lane padding


# ----------------------------------------------------------------------------
# Pure-JAX reference (training-mode BN, biased batch variance) for validation.
# ----------------------------------------------------------------------------
def _ref_conv(x_nhwc, w_oihw, stride, pad):
    return jax.lax.conv_general_dilated(
        x_nhwc, jnp.transpose(w_oihw, (2, 3, 1, 0)),
        window_strides=(stride, stride),
        padding=[(pad, pad), (pad, pad)],
        dimension_numbers=("NHWC", "HWIO", "NHWC"))


def _ref_bn(x, g, b, eps=_EPS):
    mean = jnp.mean(x, axis=(0, 1, 2), keepdims=True)
    var = jnp.mean(jnp.square(x - mean), axis=(0, 1, 2), keepdims=True)
    return (x - mean) * jax.lax.rsqrt(var + eps) * g + b


def ref_stack_layer(x_nhwc, blocks):
    x = x_nhwc
    for p in blocks:
        c1 = _ref_conv(x, p["conv1_w_raw"], p["stride"], 1)
        b1 = jnp.maximum(_ref_bn(c1, p["bn1_g_raw"], p["bn1_b_raw"]), 0.0)
        c2 = _ref_conv(b1, p["conv2_w_raw"], 1, 1)
        b2 = _ref_bn(c2, p["bn2_g_raw"], p["bn2_b_raw"])
        if p["has_proj"]:
            sc = _ref_conv(x, p["proj_w_raw"], p["stride"], 0)
            sc = _ref_bn(sc, p["proj_bn_g_raw"], p["proj_bn_b_raw"])
        else:
            sc = x
        x = jnp.maximum(b2 + sc, 0.0)
    return x


# ----------------------------------------------------------------------------
if __name__ == "__main__":
    key = jax.random.PRNGKey(0)
    kx, kp = jax.random.split(key)

    # stack_layer(filters=8, block_fn=standard_block, strides=2,
    #             resnet_size=2, first_num_filters=4) on a (2, 4, 16, 16) input.
    N, C, H, W = 2, 4, 16, 16
    x_nchw = jax.random.normal(kx, (N, C, H, W), jnp.float32)   # PyTorch layout
    x_nhwc = jnp.transpose(x_nchw, (0, 2, 3, 1))                # kernel layout

    params = init_stack_layer(kp, filters=8, strides=2,
                              resnet_size=2, first_num_filters=4)

    fwd = jax.jit(lambda x: stack_layer_fwd(x, params))
    out = jax.block_until_ready(fwd(x_nhwc))

    assert out.shape == (2, 8, 8, 8), out.shape   # NHWC
    assert bool(jnp.all(jnp.isfinite(out)))
    assert bool(jnp.all(out >= 0.0))              # final ReLU

    ref = jax.block_until_ready(ref_stack_layer(x_nhwc, params))
    err = float(jnp.max(jnp.abs(out - ref)))
    assert err < 1e-2, f"mismatch vs reference: max abs err {err}"

    print("KERNEL_OK")
</pallas_src>

<mosaic_0001>
module attributes {stable_mosaic.version = 11 : i64} {
  func.func @_matmul_stats_kernel(%arg0: i32, %arg1: i32, %arg2: i32, %arg3: memref<128x128xf32, #tpu.memory_space<vmem>>, %arg4: memref<128x128xf32, #tpu.memory_space<vmem>>, %arg5: memref<128x128xf32, #tpu.memory_space<vmem>>, %arg6: memref<1x2x128xf32, #tpu.memory_space<vmem>>, %arg7: memref<128x128xf32, #tpu.memory_space<vmem>>) attributes {dimension_semantics = [#tpu.dimension_semantics<parallel>, #tpu.dimension_semantics<parallel>, #tpu.dimension_semantics<arbitrary>], iteration_bounds = array<i64: 1, 1, 1>, scalar_prefetch = 0 : i64, scratch_operands = 1 : i64, tpu.core_type = #tpu.core_type<tc>, window_params = [{transform_indices = @transform_0, window_bounds = array<i64: 128, 128>}, {transform_indices = @transform_1, window_bounds = array<i64: 128, 128>}, {transform_indices = @transform_2, window_bounds = array<i64: 128, 128>}, {transform_indices = @transform_3, window_bounds = array<i64: 1, 2, 128>}]} {
    %c0_i32 = arith.constant 0 : i32
    %0 = arith.cmpi eq, %arg2, %c0_i32 : i32
    %1 = arith.extui %0 : i1 to i32
    %c0_i32_0 = arith.constant 0 : i32
    %2 = arith.cmpi ne, %1, %c0_i32_0 : i32
    scf.if %2 {
      %cst_10 = arith.constant 0.000000e+00 : f32
      %12 = vector.broadcast %cst_10 : f32 to vector<128x128xf32>
      %c0_11 = arith.constant 0 : index
      %c0_12 = arith.constant 0 : index
      %13 = vector.load %arg7[%c0_11, %c0_12] : memref<128x128xf32, #tpu.memory_space<vmem>>, vector<128x128xf32>
      tpu.vector_store %arg7[%c0_11, %c0_12], %12 {strides = array<i32>} : memref<128x128xf32, #tpu.memory_space<vmem>>, vector<128x128xf32>,
    } else {
    }
    %c0 = arith.constant 0 : index
    %c0_1 = arith.constant 0 : index
    %3 = vector.load %arg7[%c0, %c0_1] : memref<128x128xf32, #tpu.memory_space<vmem>>, vector<128x128xf32>
    %c0_2 = arith.constant 0 : index
    %c0_3 = arith.constant 0 : index
    %4 = vector.load %arg3[%c0_2, %c0_3] : memref<128x128xf32, #tpu.memory_space<vmem>>, vector<128x128xf32>
    %c0_4 = arith.constant 0 : index
    %c0_5 = arith.constant 0 : index
    %5 = vector.load %arg4[%c0_4, %c0_5] : memref<128x128xf32, #tpu.memory_space<vmem>>, vector<128x128xf32>
    %cst = arith.constant dense<0.000000e+00> : vector<128x128xf32>
    %6 = tpu.matmul %4, %5, %cst {dimension_numbers = #tpu.dot_dimension_numbers<[1], [0], [0], [1], [0, 0, 1, 1], [], []>} : vector<128x128xf32>, vector<128x128xf32>, vector<128x128xf32> -> vector<128x128xf32>
    %7 = arith.addf %3, %6 : vector<128x128xf32>
    %c0_6 = arith.constant 0 : index
    %c0_7 = arith.constant 0 : index
    %8 = vector.load %arg7[%c0_6, %c0_7] : memref<128x128xf32, #tpu.memory_space<vmem>>, vector<128x128xf32>
    tpu.vector_store %arg7[%c0_6, %c0_7], %7 {strides = array<i32>} : memref<128x128xf32, #tpu.memory_space<vmem>>, vector<128x128xf32>,
    %c0_i32_8 = arith.constant 0 : i32
    %9 = arith.cmpi eq, %arg2, %c0_i32_8 : i32
    %10 = arith.extui %9 : i1 to i32
    %c0_i32_9 = arith.constant 0 : i32
    %11 = arith.cmpi ne, %10, %c0_i32_9 : i32
    scf.if %11 {
      %c0_10 = arith.constant 0 : index
      %c0_11 = arith.constant 0 : index
      %12 = vector.load %arg7[%c0_10, %c0_11] : memref<128x128xf32, #tpu.memory_space<vmem>>, vector<128x128xf32>
      %c0_12 = arith.constant 0 : index
      %c0_13 = arith.constant 0 : index
      %13 = vector.load %arg5[%c0_12, %c0_13] : memref<128x128xf32, #tpu.memory_space<vmem>>, vector<128x128xf32>
      tpu.vector_store %arg5[%c0_12, %c0_13], %12 {strides = array<i32>} : memref<128x128xf32, #tpu.memory_space<vmem>>, vector<128x128xf32>,
      %cst_14 = arith.constant dense<0.000000e+00> : vector<128xf32>
      %14 = vector.multi_reduction <add>, %12, %cst_14 [0] : vector<128x128xf32> to vector<128xf32>
      %15 = vector.shape_cast %14 : vector<128xf32> to vector<1x128xf32>
      %16 = arith.mulf %12, %12 : vector<128x128xf32>
      %cst_15 = arith.constant dense<0.000000e+00> : vector<128xf32>
      %17 = vector.multi_reduction <add>, %16, %cst_15 [0] : vector<128x128xf32> to vector<128xf32>
      %18 = vector.shape_cast %17 : vector<128xf32> to vector<1x128xf32>
      %19 = tpu.concatenate %15, %18 in 0 : vector<1x128xf32>, vector<1x128xf32> -> vector<2x128xf32>
      %20 = vector.shape_cast %19 : vector<2x128xf32> to vector<1x2x128xf32>
      %c0_16 = arith.constant 0 : index
      %c0_17 = arith.constant 0 : index
      %c0_18 = arith.constant 0 : index
      %21 = vector.load %arg6[%c0_16, %c0_17, %c0_18] : memref<1x2x128xf32, #tpu.memory_space<vmem>>, vector<1x2x128xf32>
      tpu.vector_store %arg6[%c0_16, %c0_17, %c0_18], %20 {strides = array<i32>} : memref<1x2x128xf32, #tpu.memory_space<vmem>>, vector<1x2x128xf32>,
    } else {
    }
    return
  }
  func.func @transform_0(%arg0: i32, %arg1: i32, %arg2: i32) -> (i32, i32) {
    %c0_i32 = arith.constant 0 : i32
    return %arg0, %arg2 : i32, i32
  }
  func.func @transform_1(%arg0: i32, %arg1: i32, %arg2: i32) -> (i32, i32) {
    %c0_i32 = arith.constant 0 : i32
    return %arg2, %arg1 : i32, i32
  }
  func.func @transform_2(%arg0: i32, %arg1: i32, %arg2: i32) -> (i32, i32) {
    %c0_i32 = arith.constant 0 : i32
    return %arg0, %arg1 : i32, i32
  }
  func.func @transform_3(%arg0: i32, %arg1: i32, %arg2: i32) -> (i32, i32, i32) {
    %c0_i32 = arith.constant 0 : i32
    %c0_i32_0 = arith.constant 0 : i32
    return %arg0, %c0_i32, %arg1 : i32, i32, i32
  }
}

module attributes {stable_mosaic.version = 11 : i64} {
  func.func @_matmul_stats_kernel(%arg0: i32, %arg1: i32, %arg2: i32, %arg3: memref<128x384xf32, #tpu.memory_space<vmem>>, %arg4: memref<384x128xf32, #tpu.memory_space<vmem>>, %arg5: memref<128x128xf32, #tpu.memory_space<vmem>>, %arg6: memref<1x2x128xf32, #tpu.memory_space<vmem>>, %arg7: memref<128x128xf32, #tpu.memory_space<vmem>>) attributes {dimension_semantics = [#tpu.dimension_semantics<parallel>, #tpu.dimension_semantics<parallel>, #tpu.dimension_semantics<arbitrary>], iteration_bounds = array<i64: 1, 1, 3>, scalar_prefetch = 0 : i64, scratch_operands = 1 : i64, tpu.core_type = #tpu.core_type<tc>, window_params = [{transform_indices = @transform_0, window_bounds = array<i64: 128, 384>}, {transform_indices = @transform_1, window_bounds = array<i64: 384, 128>}, {transform_indices = @transform_2, window_bounds = array<i64: 128, 128>}, {transform_indices = @transform_3, window_bounds = array<i64: 1, 2, 128>}]} {
    %c0_i32 = arith.constant 0 : i32
    %0 = arith.cmpi eq, %arg2, %c0_i32 : i32
    %1 = arith.extui %0 : i1 to i32
    %c0_i32_0 = arith.constant 0 : i32
    %2 = arith.cmpi ne, %1, %c0_i32_0 : i32
    scf.if %2 {
      %cst_9 = arith.constant 0.000000e+00 : f32
      %12 = vector.broadcast %cst_9 : f32 to vector<128x128xf32>
      %c0_10 = arith.constant 0 : index
      %c0_11 = arith.constant 0 : index
      %13 = vector.load %arg7[%c0_10, %c0_11] : memref<128x128xf32, #tpu.memory_space<vmem>>, vector<128x128xf32>
      tpu.vector_store %arg7[%c0_10, %c0_11], %12 {strides = array<i32>} : memref<128x128xf32, #tpu.memory_space<vmem>>, vector<128x128xf32>,
    } else {
    }
    %c0 = arith.constant 0 : index
    %c0_1 = arith.constant 0 : index
    %3 = vector.load %arg7[%c0, %c0_1] : memref<128x128xf32, #tpu.memory_space<vmem>>, vector<128x128xf32>
    %c0_2 = arith.constant 0 : index
    %c0_3 = arith.constant 0 : index
    %4 = vector.load %arg3[%c0_2, %c0_3] : memref<128x384xf32, #tpu.memory_space<vmem>>, vector<128x384xf32>
    %c0_4 = arith.constant 0 : index
    %c0_5 = arith.constant 0 : index
    %5 = vector.load %arg4[%c0_4, %c0_5] : memref<384x128xf32, #tpu.memory_space<vmem>>, vector<384x128xf32>
    %cst = arith.constant dense<0.000000e+00> : vector<128x128xf32>
    %6 = tpu.matmul %4, %5, %cst {dimension_numbers = #tpu.dot_dimension_numbers<[1], [0], [0], [1], [0, 0, 1, 1], [], []>} : vector<128x384xf32>, vector<384x128xf32>, vector<128x128xf32> -> vector<128x128xf32>
    %7 = arith.addf %3, %6 : vector<128x128xf32>
    %c0_6 = arith.constant 0 : index
    %c0_7 = arith.constant 0 : index
    %8 = vector.load %arg7[%c0_6, %c0_7] : memref<128x128xf32, #tpu.memory_space<vmem>>, vector<128x128xf32>
    tpu.vector_store %arg7[%c0_6, %c0_7], %7 {strides = array<i32>} : memref<128x128xf32, #tpu.memory_space<vmem>>, vector<128x128xf32>,
    %c2_i32 = arith.constant 2 : i32
    %9 = arith.cmpi eq, %arg2, %c2_i32 : i32
    %10 = arith.extui %9 : i1 to i32
    %c0_i32_8 = arith.constant 0 : i32
    %11 = arith.cmpi ne, %10, %c0_i32_8 : i32
    scf.if %11 {
      %c0_9 = arith.constant 0 : index
      %c0_10 = arith.constant 0 : index
      %12 = vector.load %arg7[%c0_9, %c0_10] : memref<128x128xf32, #tpu.memory_space<vmem>>, vector<128x128xf32>
      %c0_11 = arith.constant 0 : index
      %c0_12 = arith.constant 0 : index
      %13 = vector.load %arg5[%c0_11, %c0_12] : memref<128x128xf32, #tpu.memory_space<vmem>>, vector<128x128xf32>
      tpu.vector_store %arg5[%c0_11, %c0_12], %12 {strides = array<i32>} : memref<128x128xf32, #tpu.memory_space<vmem>>, vector<128x128xf32>,
      %cst_13 = arith.constant dense<0.000000e+00> : vector<128xf32>
      %14 = vector.multi_reduction <add>, %12, %cst_13 [0] : vector<128x128xf32> to vector<128xf32>
      %15 = vector.shape_cast %14 : vector<128xf32> to vector<1x128xf32>
      %16 = arith.mulf %12, %12 : vector<128x128xf32>
      %cst_14 = arith.constant dense<0.000000e+00> : vector<128xf32>
      %17 = vector.multi_reduction <add>, %16, %cst_14 [0] : vector<128x128xf32> to vector<128xf32>
      %18 = vector.shape_cast %17 : vector<128xf32> to vector<1x128xf32>
      %19 = tpu.concatenate %15, %18 in 0 : vector<1x128xf32>, vector<1x128xf32> -> vector<2x128xf32>
      %20 = vector.shape_cast %19 : vector<2x128xf32> to vector<1x2x128xf32>
      %c0_15 = arith.constant 0 : index
      %c0_16 = arith.constant 0 : index
      %c0_17 = arith.constant 0 : index
      %21 = vector.load %arg6[%c0_15, %c0_16, %c0_17] : memref<1x2x128xf32, #tpu.memory_space<vmem>>, vector<1x2x128xf32>
      tpu.vector_store %arg6[%c0_15, %c0_16, %c0_17], %20 {strides = array<i32>} : memref<1x2x128xf32, #tpu.memory_space<vmem>>, vector<1x2x128xf32>,
    } else {
    }
    return
  }
  func.func @transform_0(%arg0: i32, %arg1: i32, %arg2: i32) -> (i32, i32) {
    %c0_i32 = arith.constant 0 : i32
    return %arg0, %arg2 : i32, i32
  }
  func.func @transform_1(%arg0: i32, %arg1: i32, %arg2: i32) -> (i32, i32) {
    %c0_i32 = arith.constant 0 : i32
    return %arg2, %arg1 : i32, i32
  }
  func.func @transform_2(%arg0: i32, %arg1: i32, %arg2: i32) -> (i32, i32) {
    %c0_i32 = arith.constant 0 : i32
    return %arg0, %arg1 : i32, i32
  }
  func.func @transform_3(%arg0: i32, %arg1: i32, %arg2: i32) -> (i32, i32, i32) {
    %c0_i32 = arith.constant 0 : i32
    %c0_i32_0 = arith.constant 0 : i32
    return %arg0, %c0_i32, %arg1 : i32, i32, i32
  }
}

module attributes {stable_mosaic.version = 11 : i64} {
  func.func @_bn_apply_kernel(%arg0: i32, %arg1: memref<128x128xf32, #tpu.memory_space<vmem>>, %arg2: memref<1x128xf32, #tpu.memory_space<vmem>>, %arg3: memref<1x128xf32, #tpu.memory_space<vmem>>, %arg4: memref<128x128xf32, #tpu.memory_space<vmem>>) attributes {dimension_semantics = [#tpu.dimension_semantics<parallel>], iteration_bounds = array<i64: 1>, scalar_prefetch = 0 : i64, scratch_operands = 0 : i64, tpu.core_type = #tpu.core_type<tc>, window_params = [{transform_indices = @transform_0, window_bounds = array<i64: 128, 128>}, {pipeline_mode = #tpu.pipeline_mode<synchronous>, transform_indices = @transform_1, window_bounds = array<i64: 1, 128>}, {pipeline_mode = #tpu.pipeline_mode<synchronous>, transform_indices = @transform_2, window_bounds = array<i64: 1, 128>}, {transform_indices = @transform_3, window_bounds = array<i64: 128, 128>}]} {
    %c0 = arith.constant 0 : index
    %c0_0 = arith.constant 0 : index
    %0 = vector.load %arg1[%c0, %c0_0] : memref<128x128xf32, #tpu.memory_space<vmem>>, vector<128x128xf32>
    %c0_1 = arith.constant 0 : index
    %c0_2 = arith.constant 0 : index
    %1 = vector.load %arg2[%c0_1, %c0_2] : memref<1x128xf32, #tpu.memory_space<vmem>>, vector<1x128xf32>
    %2 = vector.broadcast %1 : vector<1x128xf32> to vector<128x128xf32>
    %3 = arith.mulf %0, %2 : vector<128x128xf32>
    %c0_3 = arith.constant 0 : index
    %c0_4 = arith.constant 0 : index
    %4 = vector.load %arg3[%c0_3, %c0_4] : memref<1x128xf32, #tpu.memory_space<vmem>>, vector<1x128xf32>
    %5 = vector.broadcast %4 : vector<1x128xf32> to vector<128x128xf32>
    %6 = arith.addf %3, %5 : vector<128x128xf32>
    %cst = arith.constant 0.000000e+00 : f32
    %7 = vector.broadcast %cst : f32 to vector<128x128xf32>
    %8 = arith.maximumf %6, %7 : vector<128x128xf32>
    %c0_5 = arith.constant 0 : index
    %c0_6 = arith.constant 0 : index
    %9 = vector.load %arg4[%c0_5, %c0_6] : memref<128x128xf32, #tpu.memory_space<vmem>>, vector<128x128xf32>
    tpu.vector_store %arg4[%c0_5, %c0_6], %8 {strides = array<i32>} : memref<128x128xf32, #tpu.memory_space<vmem>>, vector<128x128xf32>,
    return
  }
  func.func @transform_0(%arg0: i32) -> (i32, i32) {
    %c0_i32 = arith.constant 0 : i32
    %c0_i32_0 = arith.constant 0 : i32
    return %arg0, %c0_i32 : i32, i32
  }
  func.func @transform_1(%arg0: i32) -> (i32, i32) {
    %c0_i32 = arith.constant 0 : i32
    %c0_i32_0 = arith.constant 0 : i32
    %c0_i32_1 = arith.constant 0 : i32
    return %c0_i32, %c0_i32_0 : i32, i32
  }
  func.func @transform_2(%arg0: i32) -> (i32, i32) {
    %c0_i32 = arith.constant 0 : i32
    %c0_i32_0 = arith.constant 0 : i32
    %c0_i32_1 = arith.constant 0 : i32
    return %c0_i32, %c0_i32_0 : i32, i32
  }
  func.func @transform_3(%arg0: i32) -> (i32, i32) {
    %c0_i32 = arith.constant 0 : i32
    %c0_i32_0 = arith.constant 0 : i32
    return %arg0, %c0_i32 : i32, i32
  }
}

module attributes {stable_mosaic.version = 11 : i64} {
  func.func @_bn_residual_relu_kernel(%arg0: i32, %arg1: memref<128x128xf32, #tpu.memory_space<vmem>>, %arg2: memref<1x128xf32, #tpu.memory_space<vmem>>, %arg3: memref<1x128xf32, #tpu.memory_space<vmem>>, %arg4: memref<128x128xf32, #tpu.memory_space<vmem>>, %arg5: memref<1x128xf32, #tpu.memory_space<vmem>>, %arg6: memref<1x128xf32, #tpu.memory_space<vmem>>, %arg7: memref<128x128xf32, #tpu.memory_space<vmem>>) attributes {dimension_semantics = [#tpu.dimension_semantics<parallel>], iteration_bounds = array<i64: 1>, scalar_prefetch = 0 : i64, scratch_operands = 0 : i64, tpu.core_type = #tpu.core_type<tc>, window_params = [{transform_indices = @transform_0, window_bounds = array<i64: 128, 128>}, {pipeline_mode = #tpu.pipeline_mode<synchronous>, transform_indices = @transform_1, window_bounds = array<i64: 1, 128>}, {pipeline_mode = #tpu.pipeline_mode<synchronous>, transform_indices = @transform_2, window_bounds = array<i64: 1, 128>}, {transform_indices = @transform_3, window_bounds = array<i64: 128, 128>}, {pipeline_mode = #tpu.pipeline_mode<synchronous>, transform_indices = @transform_4, window_bounds = array<i64: 1, 128>}, {pipeline_mode = #tpu.pipeline_mode<synchronous>, transform_indices = @transform_5, window_bounds = array<i64: 1, 128>}, {transform_indices = @transform_6, window_bounds = array<i64: 128, 128>}]} {
    %c0 = arith.constant 0 : index
    %c0_0 = arith.constant 0 : index
    %0 = vector.load %arg1[%c0, %c0_0] : memref<128x128xf32, #tpu.memory_space<vmem>>, vector<128x128xf32>
    %c0_1 = arith.constant 0 : index
    %c0_2 = arith.constant 0 : index
    %1 = vector.load %arg2[%c0_1, %c0_2] : memref<1x128xf32, #tpu.memory_space<vmem>>, vector<1x128xf32>
    %2 = vector.broadcast %1 : vector<1x128xf32> to vector<128x128xf32>
    %3 = arith.mulf %0, %2 : vector<128x128xf32>
    %c0_3 = arith.constant 0 : index
    %c0_4 = arith.constant 0 : index
    %4 = vector.load %arg3[%c0_3, %c0_4] : memref<1x128xf32, #tpu.memory_space<vmem>>, vector<1x128xf32>
    %5 = vector.broadcast %4 : vector<1x128xf32> to vector<128x128xf32>
    %6 = arith.addf %3, %5 : vector<128x128xf32>
    %c0_5 = arith.constant 0 : index
    %c0_6 = arith.constant 0 : index
    %7 = vector.load %arg4[%c0_5, %c0_6] : memref<128x128xf32, #tpu.memory_space<vmem>>, vector<128x128xf32>
    %c0_7 = arith.constant 0 : index
    %c0_8 = arith.constant 0 : index
    %8 = vector.load %arg5[%c0_7, %c0_8] : memref<1x128xf32, #tpu.memory_space<vmem>>, vector<1x128xf32>
    %9 = vector.broadcast %8 : vector<1x128xf32> to vector<128x128xf32>
    %10 = arith.mulf %7, %9 : vector<128x128xf32>
    %c0_9 = arith.constant 0 : index
    %c0_10 = arith.constant 0 : index
    %11 = vector.load %arg6[%c0_9, %c0_10] : memref<1x128xf32, #tpu.memory_space<vmem>>, vector<1x128xf32>
    %12 = vector.broadcast %11 : vector<1x128xf32> to vector<128x128xf32>
    %13 = arith.addf %10, %12 : vector<128x128xf32>
    %14 = arith.addf %6, %13 : vector<128x128xf32>
    %cst = arith.constant 0.000000e+00 : f32
    %15 = vector.broadcast %cst : f32 to vector<128x128xf32>
    %16 = arith.maximumf %14, %15 : vector<128x128xf32>
    %c0_11 = arith.constant 0 : index
    %c0_12 = arith.constant 0 : index
    %17 = vector.load %arg7[%c0_11, %c0_12] : memref<128x128xf32, #tpu.memory_space<vmem>>, vector<128x128xf32>
    tpu.vector_store %arg7[%c0_11, %c0_12], %16 {strides = array<i32>} : memref<128x128xf32, #tpu.memory_space<vmem>>, vector<128x128xf32>,
    return
  }
  func.func @transform_0(%arg0: i32) -> (i32, i32) {
    %c0_i32 = arith.constant 0 : i32
    %c0_i32_0 = arith.constant 0 : i32
    return %arg0, %c0_i32 : i32, i32
  }
  func.func @transform_1(%arg0: i32) -> (i32, i32) {
    %c0_i32 = arith.constant 0 : i32
    %c0_i32_0 = arith.constant 0 : i32
    %c0_i32_1 = arith.constant 0 : i32
    return %c0_i32, %c0_i32_0 : i32, i32
  }
  func.func @transform_2(%arg0: i32) -> (i32, i32) {
    %c0_i32 = arith.constant 0 : i32
    %c0_i32_0 = arith.constant 0 : i32
    %c0_i32_1 = arith.constant 0 : i32
    return %c0_i32, %c0_i32_0 : i32, i32
  }
  func.func @transform_3(%arg0: i32) -> (i32, i32) {
    %c0_i32 = arith.constant 0 : i32
    %c0_i32_0 = arith.constant 0 : i32
    return %arg0, %c0_i32 : i32, i32
  }
  func.func @transform_4(%arg0: i32) -> (i32, i32) {
    %c0_i32 = arith.constant 0 : i32
    %c0_i32_0 = arith.constant 0 : i32
    %c0_i32_1 = arith.constant 0 : i32
    return %c0_i32, %c0_i32_0 : i32, i32
  }
  func.func @transform_5(%arg0: i32) -> (i32, i32) {
    %c0_i32 = arith.constant 0 : i32
    %c0_i32_0 = arith.constant 0 : i32
    %c0_i32_1 = arith.constant 0 : i32
    return %c0_i32, %c0_i32_0 : i32, i32
  }
  func.func @transform_6(%arg0: i32) -> (i32, i32) {
    %c0_i32 = arith.constant 0 : i32
    %c0_i32_0 = arith.constant 0 : i32
    return %arg0, %c0_i32 : i32, i32
  }
}

module attributes {stable_mosaic.version = 11 : i64} {
  func.func @_bn_residual_relu_kernel(%arg0: i32, %arg1: memref<128x128xf32, #tpu.memory_space<vmem>>, %arg2: memref<1x128xf32, #tpu.memory_space<vmem>>, %arg3: memref<1x128xf32, #tpu.memory_space<vmem>>, %arg4: memref<128x128xf32, #tpu.memory_space<vmem>>, %arg5: memref<1x128xf32, #tpu.memory_space<vmem>>, %arg6: memref<1x128xf32, #tpu.memory_space<vmem>>, %arg7: memref<128x128xf32, #tpu.memory_space<vmem>>) attributes {dimension_semantics = [#tpu.dimension_semantics<parallel>], iteration_bounds = array<i64: 1>, scalar_prefetch = 0 : i64, scratch_operands = 0 : i64, tpu.core_type = #tpu.core_type<tc>, window_params = [{transform_indices = @transform_0, window_bounds = array<i64: 128, 128>}, {pipeline_mode = #tpu.pipeline_mode<synchronous>, transform_indices = @transform_1, window_bounds = array<i64: 1, 128>}, {pipeline_mode = #tpu.pipeline_mode<synchronous>, transform_indices = @transform_2, window_bounds = array<i64: 1, 128>}, {transform_indices = @transform_3, window_bounds = array<i64: 128, 128>}, {pipeline_mode = #tpu.pipeline_mode<synchronous>, transform_indices = @transform_4, window_bounds = array<i64: 1, 128>}, {pipeline_mode = #tpu.pipeline_mode<synchronous>, transform_indices = @transform_5, window_bounds = array<i64: 1, 128>}, {transform_indices = @transform_6, window_bounds = array<i64: 128, 128>}]} {
    %c0 = arith.constant 0 : index
    %c0_0 = arith.constant 0 : index
    %0 = vector.load %arg1[%c0, %c0_0] : memref<128x128xf32, #tpu.memory_space<vmem>>, vector<128x128xf32>
    %c0_1 = arith.constant 0 : index
    %c0_2 = arith.constant 0 : index
    %1 = vector.load %arg2[%c0_1, %c0_2] : memref<1x128xf32, #tpu.memory_space<vmem>>, vector<1x128xf32>
    %2 = vector.broadcast %1 : vector<1x128xf32> to vector<128x128xf32>
    %3 = arith.mulf %0, %2 : vector<128x128xf32>
    %c0_3 = arith.constant 0 : index
    %c0_4 = arith.constant 0 : index
    %4 = vector.load %arg3[%c0_3, %c0_4] : memref<1x128xf32, #tpu.memory_space<vmem>>, vector<1x128xf32>
    %5 = vector.broadcast %4 : vector<1x128xf32> to vector<128x128xf32>
    %6 = arith.addf %3, %5 : vector<128x128xf32>
    %c0_5 = arith.constant 0 : index
    %c0_6 = arith.constant 0 : index
    %7 = vector.load %arg4[%c0_5, %c0_6] : memref<128x128xf32, #tpu.memory_space<vmem>>, vector<128x128xf32>
    %c0_7 = arith.constant 0 : index
    %c0_8 = arith.constant 0 : index
    %8 = vector.load %arg5[%c0_7, %c0_8] : memref<1x128xf32, #tpu.memory_space<vmem>>, vector<1x128xf32>
    %9 = vector.broadcast %8 : vector<1x128xf32> to vector<128x128xf32>
    %10 = arith.mulf %7, %9 : vector<128x128xf32>
    %c0_9 = arith.constant 0 : index
    %c0_10 = arith.constant 0 : index
    %11 = vector.load %arg6[%c0_9, %c0_10] : memref<1x128xf32, #tpu.memory_space<vmem>>, vector<1x128xf32>
    %12 = vector.broadcast %11 : vector<1x128xf32> to vector<128x128xf32>
    %13 = arith.addf %10, %12 : vector<128x128xf32>
    %14 = arith.addf %6, %13 : vector<128x128xf32>
    %cst = arith.constant 0.000000e+00 : f32
    %15 = vector.broadcast %cst : f32 to vector<128x128xf32>
    %16 = arith.maximumf %14, %15 : vector<128x128xf32>
    %c0_11 = arith.constant 0 : index
    %c0_12 = arith.constant 0 : index
    %17 = vector.load %arg7[%c0_11, %c0_12] : memref<128x128xf32, #tpu.memory_space<vmem>>, vector<128x128xf32>
    tpu.vector_store %arg7[%c0_11, %c0_12], %16 {strides = array<i32>} : memref<128x128xf32, #tpu.memory_space<vmem>>, vector<128x128xf32>,
    return
  }
  func.func @transform_0(%arg0: i32) -> (i32, i32) {
    %c0_i32 = arith.constant 0 : i32
    %c0_i32_0 = arith.constant 0 : i32
    return %arg0, %c0_i32 : i32, i32
  }
  func.func @transform_1(%arg0: i32) -> (i32, i32) {
    %c0_i32 = arith.constant 0 : i32
    %c0_i32_0 = arith.constant 0 : i32
    %c0_i32_1 = arith.constant 0 : i32
    return %c0_i32, %c0_i32_0 : i32, i32
  }
  func.func @transform_2(%arg0: i32) -> (i32, i32) {
    %c0_i32 = arith.constant 0 : i32
    %c0_i32_0 = arith.constant 0 : i32
    %c0_i32_1 = arith.constant 0 : i32
    return %c0_i32, %c0_i32_0 : i32, i32
  }
  func.func @transform_3(%arg0: i32) -> (i32, i32) {
    %c0_i32 = arith.constant 0 : i32
    %c0_i32_0 = arith.constant 0 : i32
    return %arg0, %c0_i32 : i32, i32
  }
  func.func @transform_4(%arg0: i32) -> (i32, i32) {
    %c0_i32 = arith.constant 0 : i32
    %c0_i32_0 = arith.constant 0 : i32
    %c0_i32_1 = arith.constant 0 : i32
    return %c0_i32, %c0_i32_0 : i32, i32
  }
  func.func @transform_5(%arg0: i32) -> (i32, i32) {
    %c0_i32 = arith.constant 0 : i32
    %c0_i32_0 = arith.constant 0 : i32
    %c0_i32_1 = arith.constant 0 : i32
    return %c0_i32, %c0_i32_0 : i32, i32
  }
  func.func @transform_6(%arg0: i32) -> (i32, i32) {
    %c0_i32 = arith.constant 0 : i32
    %c0_i32_0 = arith.constant 0 : i32
    return %arg0, %c0_i32 : i32, i32
  }
}

</mosaic_0001>

<bundles_post_ra>
// kernel: _lambda_.12
= control target key start
LH: loop header
LB: loop body
LE: loop exit
PB: predicated region body
PF: predicated region fallthrough
CT: control target
= control target key end

     0   :  { %vm351_vm0 = vcmask 1040384   ;;  %s665_s1 = inlined_call_operand.vmem [shape: f32[128,128], index: 1, kind: input, shape index: {}]   ;;  %s666_s0 = inlined_call_operand.vmem [shape: f32[128,128], index: 0, kind: input, shape index: {}]   ;;  %s667_s2 = inlined_call_operand.vmem [shape: f32[128,128], index: 2, kind: output, shape index: {0}]   ;;  %s668_s3 = inlined_call_operand.vmem [shape: f32[1,2,128], index: 3, kind: output, shape index: {1}]  }
   0x1   :  { %v65_v0 = vld [vmem:[%s665_s1] sm:$0xff]  ;;  %v66_v1 = vld [vmem:[%s665_s1 + $0x8] sm:$0xff]  ;;  %v67_v2 = vld [vmem:[%s665_s1 + $0x10] sm:$0xff] }
   0x2   :  { %v450_v3 = vpack.c.bf16 %v66_v1, %v65_v0  ;;  %v68_v4 = vld [vmem:[%s665_s1 + $0x18] sm:$0xff]  ;;  %v69_v6 = vld [vmem:[%s665_s1 + $0x20] sm:$0xff]  ;;  %v70_v7 = vld [vmem:[%s665_s1 + $0x28] sm:$0xff] }
   0x3   :  { %v454_v5 = vpack.c.bf16 %v68_v4, %v67_v2  ;;  %v458_v8 = vpack.c.bf16 %v70_v7, %v69_v6  ;;  %v49_v9 = vld [vmem:[%s666_s0] sm:$0xff]  ;;  %v71_v10 = vld [vmem:[%s665_s1 + $0x30] sm:$0xff]  ;;  %v72_v11 = vld [vmem:[%s665_s1 + $0x38] sm:$0xff] }
   0x4   :  { %451 = vmatprep.subr.bf16.mxu0 %v450_v3  ;;  %482 = vmatprep.subr.bf16.mxu1 %v450_v3  ;;  %v57_v12 = vld [vmem:[%s666_s0 + $0x40] sm:$0xff]  ;;  %v462_v13 = vpack.c.bf16 %v72_v11, %v71_v10  ;;  %v74_v15 = vld [vmem:[%s665_s1 + $0x48] sm:$0xff]  ;;  %v75_v17 = vld [vmem:[%s665_s1 + $0x50] sm:$0xff] }
   0x5   :  { %453 = vmatpush3.bf16.msra.mxu0 %v450_v3  ;;  %490 = vmatpush3.bf16.msra.mxu1 %v450_v3  ;;  %v73_v14 = vld [vmem:[%s665_s1 + $0x40] sm:$0xff]  ;;  %v76_v18 = vld [vmem:[%s665_s1 + $0x58] sm:$0xff]  ;;  %v78_v21 = vld [vmem:[%s665_s1 + $0x68] sm:$0xff] }
   0x6   :  { %455 = vmatprep.subr.bf16.mxu0 %v454_v5  ;;  %483 = vmatprep.subr.bf16.mxu1 %v454_v5  ;;  %v466_v16 = vpack.c.bf16 %v74_v15, %v73_v14  ;;  %v470_v19 = vpack.c.bf16 %v76_v18, %v75_v17  ;;  %v77_v20 = vld [vmem:[%s665_s1 + $0x60] sm:$0xff]  ;;  %v79_v23 = vld [vmem:[%s665_s1 + $0x70] sm:$0xff]  ;;  %v80_v24 = vld [vmem:[%s665_s1 + $0x78] sm:$0xff] }
   0x7   :  { %426 = vmatprep.mubr.f32.mxu0 %v49_v9  ;;  %438 = vmatprep.mubr.f32.mxu1 %v57_v12  ;;  %v474_v22 = vpack.c.bf16 %v78_v21, %v77_v20  ;;  %v478_v25 = vpack.c.bf16 %v80_v24, %v79_v23  ;;  %v50_v26 = vld [vmem:[%s666_s0 + $0x8] sm:$0xff]  ;;  %v51_v28 = vld [vmem:[%s666_s0 + $0x10] sm:$0xff]  ;;  %v52_v30 = vld [vmem:[%s666_s0 + $0x18] sm:$0xff] }
   0x8   :  { %v58_v27 = vld [vmem:[%s666_s0 + $0x48] sm:$0xff]  ;;  %v59_v29 = vld [vmem:[%s666_s0 + $0x50] sm:$0xff]  ;;  %v60_v31 = vld [vmem:[%s666_s0 + $0x58] sm:$0xff] }
   0x9   :  { %457 = vmatpush3.bf16.msra.mxu0 %v454_v5  ;;  %491 = vmatpush3.bf16.msra.mxu1 %v454_v5  ;;  %v53_v32 = vld [vmem:[%s666_s0 + $0x20] sm:$0xff]  ;;  %v54_v34 = vld [vmem:[%s666_s0 + $0x28] sm:$0xff]  ;;  %v55_v36 = vld [vmem:[%s666_s0 + $0x30] sm:$0xff] }
   0xa   :  { %459 = vmatprep.subr.bf16.mxu0 %v458_v8  ;;  %484 = vmatprep.subr.bf16.mxu1 %v458_v8  ;;  %v61_v33 = vld [vmem:[%s666_s0 + $0x60] sm:$0xff]  ;;  %v62_v35 = vld [vmem:[%s666_s0 + $0x68] sm:$0xff]  ;;  %v63_v37 = vld [vmem:[%s666_s0 + $0x70] sm:$0xff] }
   0xb   :  { %v56_v38 = vld [vmem:[%s666_s0 + $0x38] sm:$0xff] }
   0xc   :  { %v64_v39 = vld [vmem:[%s666_s0 + $0x78] sm:$0xff] }
   0xd   :  { %461 = vmatpush3.bf16.msra.mxu0 %v458_v8  ;;  %492 = vmatpush3.bf16.msra.mxu1 %v458_v8 }
   0xe   :  { %463 = vmatprep.subr.bf16.mxu0 %v462_v13  ;;  %485 = vmatprep.subr.bf16.mxu1 %v462_v13 }
  0x11   :  { %465 = vmatpush3.bf16.msra.mxu0 %v462_v13  ;;  %493 = vmatpush3.bf16.msra.mxu1 %v462_v13 }
  0x12   :  { %467 = vmatprep.subr.bf16.mxu0 %v466_v16  ;;  %486 = vmatprep.subr.bf16.mxu1 %v466_v16 }
  0x15   :  { %469 = vmatpush3.bf16.msra.mxu0 %v466_v16  ;;  %494 = vmatpush3.bf16.msra.mxu1 %v466_v16 }
  0x16   :  { %471 = vmatprep.subr.bf16.mxu0 %v470_v19  ;;  %487 = vmatprep.subr.bf16.mxu1 %v470_v19 }
  0x19   :  { %473 = vmatpush3.bf16.msra.mxu0 %v470_v19  ;;  %495 = vmatpush3.bf16.msra.mxu1 %v470_v19 }
  0x1a   :  { %475 = vmatprep.subr.bf16.mxu0 %v474_v22  ;;  %488 = vmatprep.subr.bf16.mxu1 %v474_v22 }
  0x1d   :  { %477 = vmatpush3.bf16.msra.mxu0 %v474_v22  ;;  %496 = vmatpush3.bf16.msra.mxu1 %v474_v22 }
  0x1e   :  { %479 = vmatprep.subr.bf16.mxu0 %v478_v25  ;;  %489 = vmatprep.subr.bf16.mxu1 %v478_v25 }
  0x21   :  { %481 = vmatpush3.bf16.msra.mxu0 %v478_v25  ;;  %497 = vmatpush3.bf16.msra.mxu1 %v478_v25 }
  0x24   :  { %427 = vmatmul.mubr.f32.vlgmr.msra.gmra.mrb[0].mxu0 %v50_v26  ;;  %439 = vmatmul.mubr.f32.vlgmr.msra.gmra.mrb[0].mxu1 %v58_v27 }
  0x25   :  { %429 = vmatprep.mubr.f32.mxu0 %v51_v28  ;;  %441 = vmatprep.mubr.f32.mxu1 %v59_v29 }
  0x28   :  { %430 = vmatmul.mubr.f32.gmra.mrb[2].mxu0 %v52_v30  ;;  %442 = vmatmul.mubr.f32.gmra.mrb[2].mxu1 %v60_v31 }
  0x29   :  { %432 = vmatprep.mubr.f32.mxu0 %v53_v32  ;;  %444 = vmatprep.mubr.f32.mxu1 %v61_v33 }
  0x2c   :  { %433 = vmatmul.mubr.f32.gmra.mrb[4].mxu0 %v54_v34  ;;  %445 = vmatmul.mubr.f32.gmra.mrb[4].mxu1 %v62_v35 }
  0x2d   :  { %435 = vmatprep.mubr.f32.mxu0 %v55_v36  ;;  %447 = vmatprep.mubr.f32.mxu1 %v63_v37 }
  0x30   :  { %436 = vmatmul.mubr.f32.gmra.mrb[6].mxu0 %v56_v38  ;;  %448 = vmatmul.mubr.f32.gmra.mrb[6].mxu1 %v64_v39 }
  0xf7   :  { %v428_v40 = vpop.f32.mrb[0].mxu0  ;;  %v440_v41 = vpop.f32.mrb[0].mxu1 }
  0xf8   :  { %278 = vst [vmem:[%s667_s2 + $0x8] sm:$0xff] %v428_v40  ;;  %v315_v42 = vmul.f32 %v428_v40, %v428_v40  ;;  %v147_v43 = vpop.f32.mrb[1].mxu0  ;;  %286 = vst [vmem:[%s667_s2 + $0x48] sm:$0xff] %v440_v41  ;;  %v187_v44 = vpop.f32.mrb[1].mxu1  ;;  %v323_v16 = vmul.f32 %v440_v41, %v440_v41 }
  0xf9   :  { %277 = vst [vmem:[%s667_s2] sm:$0xff] %v147_v43  ;;  %v293_v45 = vadd.f32 %v428_v40, %v147_v43  ;;  %v314_v46 = vmul.f32 %v147_v43, %v147_v43  ;;  %285 = vst [vmem:[%s667_s2 + $0x40] sm:$0xff] %v187_v44  ;;  %v322_v13 = vmul.f32 %v187_v44, %v187_v44 }
  0xfb   :  { %v330_v47 = vadd.f32 %v315_v42, %v314_v46  ;;  %v431_v48 = vpop.f32.mrb[2].mxu0  ;;  %v443_v49 = vpop.f32.mrb[2].mxu1 }
  0xfc   :  { %280 = vst [vmem:[%s667_s2 + $0x18] sm:$0xff] %v431_v48  ;;  %v157_v50 = vpop.f32.mrb[3].mxu0  ;;  %288 = vst [vmem:[%s667_s2 + $0x58] sm:$0xff] %v443_v49  ;;  %v197_v51 = vpop.f32.mrb[3].mxu1  ;;  %v317_v54 = vmul.f32 %v431_v48, %v431_v48  ;;  %v325_v22 = vmul.f32 %v443_v49, %v443_v49 }
  0xfd   :  { %279 = vst [vmem:[%s667_s2 + $0x10] sm:$0xff] %v157_v50  ;;  %v294_v52 = vadd.f32 %v293_v45, %v157_v50  ;;  %v316_v53 = vmul.f32 %v157_v50, %v157_v50  ;;  %287 = vst [vmem:[%s667_s2 + $0x50] sm:$0xff] %v197_v51  ;;  %v324_v19 = vmul.f32 %v197_v51, %v197_v51 }
  0xff   :  { %v331_v55 = vadd.f32 %v330_v47, %v316_v53  ;;  %v434_v56 = vpop.f32.mrb[4].mxu0  ;;  %v295_v57 = vadd.f32 %v431_v48, %v294_v52  ;;  %v446_v58 = vpop.f32.mrb[4].mxu1 }
 0x100   :  { %282 = vst [vmem:[%s667_s2 + $0x28] sm:$0xff] %v434_v56  ;;  %v167_v59 = vpop.f32.mrb[5].mxu0  ;;  %290 = vst [vmem:[%s667_s2 + $0x68] sm:$0xff] %v446_v58  ;;  %v207_v60 = vpop.f32.mrb[5].mxu1  ;;  %v319_v0 = vmul.f32 %v434_v56, %v434_v56  ;;  %v327_v28 = vmul.f32 %v446_v58, %v446_v58 }
 0x101   :  { %281 = vst [vmem:[%s667_s2 + $0x20] sm:$0xff] %v167_v59  ;;  %v296_v61 = vadd.f32 %v295_v57, %v167_v59  ;;  %v318_v62 = vmul.f32 %v167_v59, %v167_v59  ;;  %v332_v63 = vadd.f32 %v331_v55, %v317_v54  ;;  %289 = vst [vmem:[%s667_s2 + $0x60] sm:$0xff] %v207_v60 }
 0x102   :  { %v326_v25 = vmul.f32 %v207_v60, %v207_v60 }
 0x103   :  { %v333_v1 = vadd.f32 %v332_v63, %v318_v62  ;;  %v437_v2 = vpop.f32.mrb[6].mxu0  ;;  %v297_v3 = vadd.f32 %v434_v56, %v296_v61  ;;  %v449_v4 = vpop.f32.mrb[6].mxu1 }
 0x104   :  { %284 = vst [vmem:[%s667_s2 + $0x38] sm:$0xff] %v437_v2  ;;  %v177_v5 = vpop.f32.mrb[7].mxu0  ;;  %292 = vst [vmem:[%s667_s2 + $0x78] sm:$0xff] %v449_v4  ;;  %v217_v6 = vpop.f32.mrb[7].mxu1  ;;  %v321_v10 = vmul.f32 %v437_v2, %v437_v2  ;;  %v329_v34 = vmul.f32 %v449_v4, %v449_v4 }
 0x105   :  { %283 = vst [vmem:[%s667_s2 + $0x30] sm:$0xff] %v177_v5  ;;  %v298_v7 = vadd.f32 %v297_v3, %v177_v5  ;;  %v320_v8 = vmul.f32 %v177_v5, %v177_v5  ;;  %v334_v9 = vadd.f32 %v333_v1, %v319_v0  ;;  %291 = vst [vmem:[%s667_s2 + $0x70] sm:$0xff] %v217_v6 }
 0x106   :  { %v328_v31 = vmul.f32 %v217_v6, %v217_v6 }
 0x107   :  { %v299_v11 = vadd.f32 %v437_v2, %v298_v7  ;;  %v335_v12 = vadd.f32 %v334_v9, %v320_v8 }
 0x109   :  { %v336_v14 = vadd.f32 %v335_v12, %v321_v10  ;;  %v300_v15 = vadd.f32 %v299_v11, %v187_v44 }
 0x10b   :  { %v337_v17 = vadd.f32 %v336_v14, %v322_v13  ;;  %v301_v18 = vadd.f32 %v440_v41, %v300_v15 }
 0x10d   :  { %v302_v20 = vadd.f32 %v301_v18, %v197_v51  ;;  %v338_v21 = vadd.f32 %v337_v17, %v323_v16 }
 0x10f   :  { %v339_v23 = vadd.f32 %v338_v21, %v324_v19  ;;  %v303_v24 = vadd.f32 %v443_v49, %v302_v20 }
 0x111   :  { %v304_v26 = vadd.f32 %v303_v24, %v207_v60  ;;  %v340_v27 = vadd.f32 %v339_v23, %v325_v22 }
 0x113   :  { %v341_v29 = vadd.f32 %v340_v27, %v326_v25  ;;  %v305_v30 = vadd.f32 %v446_v58, %v304_v26 }
 0x115   :  { %v306_v32 = vadd.f32 %v305_v30, %v217_v6  ;;  %v342_v33 = vadd.f32 %v341_v29, %v327_v28 }
 0x117   :  { %v307_v35 = vadd.f32 %v449_v4, %v306_v32  ;;  %v343_v36 = vadd.f32 %v342_v33, %v328_v31 }
 0x119   :  { %v308_v37 = vrot.slane %v307_v35, 4  ;;  %v344_v38 = vadd.f32 %v343_v36, %v329_v34 }
 0x11b   :  { %v309_v39 = vadd.f32 %v308_v37, %v307_v35  ;;  %v345_v40 = vrot.slane %v344_v38, 4 }
 0x11d   :  { %v310_v41 = vrot.slane %v309_v39, 2  ;;  %v346_v42 = vadd.f32 %v345_v40, %v344_v38 }
 0x11f   :  { %v311_v43 = vadd.f32 %v310_v41, %v309_v39  ;;  %v347_v44 = vrot.slane %v346_v42, 2 }
 0x121   :  { %v312_v45 = vrot.slane %v311_v43, 1  ;;  %v348_v46 = vadd.f32 %v347_v44, %v346_v42 }
 0x123   :  { %v349_v47 = vrot.slane %v348_v46, 1  ;;  %v313_v48 = vadd.f32 %v312_v45, %v311_v43 }
 0x125   :  { %v350_v49 = vadd.f32 %v349_v47, %v348_v46 }
 0x127   :  { %v352_v50 = vsel %vm351_vm0, %v313_v48, %v350_v49 }
 0x128   :  { %353 = vst [vmem:[%s668_s3] sm:$0x3] %v352_v50 }

// kernel: _lambda_.10
= control target key start
LH: loop header
LB: loop body
LE: loop exit
PB: predicated region body
PF: predicated region fallthrough
CT: control target
= control target key end

     0   :  { %s254_s0 = inlined_call_operand.vmem [shape: f32[128,128], index: 0, kind: input, shape index: {}]   ;;  %s255_s1 = inlined_call_operand.vmem [shape: f32[1,128], index: 1, kind: input, shape index: {}]   ;;  %s256_s2 = inlined_call_operand.vmem [shape: f32[1,128], index: 2, kind: input, shape index: {}]   ;;  %s257_s3 = inlined_call_operand.vmem [shape: f32[128,128], index: 3, kind: output, shape index: {}]  }
   0x1   :  { %v14_v0 = vld [vmem:[%s254_s0] sm:$0xff]  ;;  %v15_v4 = vld [vmem:[%s254_s0 + $0x8] sm:$0xff]  ;;  %v16_v5 = vld [vmem:[%s254_s0 + $0x10] sm:$0xff] }
   0x2   :  { %v112_v1 = vld [vmem:[%s255_s1] ss:$0 sm:$0xff]  ;;  %v17_v6 = vld [vmem:[%s254_s0 + $0x18] sm:$0xff]  ;;  %v19_v11 = vld [vmem:[%s254_s0 + $0x28] sm:$0xff] }
   0x3   :  { %v143_v2 = vld [vmem:[%s256_s2] ss:$0 sm:$0xff]  ;;  %v37_v3 = vmul.f32 %v112_v1, %v14_v0  ;;  %v38_v7 = vmul.f32 %v112_v1, %v15_v4  ;;  %v39_v8 = vmul.f32 %v112_v1, %v16_v5  ;;  %v40_v9 = vmul.f32 %v112_v1, %v17_v6  ;;  %v20_v12 = vld [vmem:[%s254_s0 + $0x30] sm:$0xff]  ;;  %v21_v17 = vld [vmem:[%s254_s0 + $0x38] sm:$0xff] }
   0x4   :  { %v18_v10 = vld [vmem:[%s254_s0 + $0x20] sm:$0xff]  ;;  %v42_v15 = vmul.f32 %v112_v1, %v19_v11  ;;  %v43_v16 = vmul.f32 %v112_v1, %v20_v12  ;;  %v44_v21 = vmul.f32 %v112_v1, %v21_v17  ;;  %v23_v27 = vld [vmem:[%s254_s0 + $0x48] sm:$0xff]  ;;  %v24_v28 = vld [vmem:[%s254_s0 + $0x50] sm:$0xff] }
   0x5   :  { %v60_v13 = vadd.f32 %v143_v2, %v37_v3  ;;  %v41_v14 = vmul.f32 %v112_v1, %v18_v10  ;;  %v61_v18 = vadd.f32 %v143_v2, %v38_v7  ;;  %v62_v19 = vadd.f32 %v143_v2, %v39_v8  ;;  %v22_v22 = vld [vmem:[%s254_s0 + $0x40] sm:$0xff]  ;;  %v25_v29 = vld [vmem:[%s254_s0 + $0x58] sm:$0xff]  ;;  %v27_v35 = vld [vmem:[%s254_s0 + $0x68] sm:$0xff] }
   0x6   :  { %v63_v20 = vadd.f32 %v143_v2, %v40_v9  ;;  %v65_v25 = vadd.f32 %v143_v2, %v42_v15  ;;  %v66_v26 = vadd.f32 %v143_v2, %v43_v16  ;;  %v67_v33 = vadd.f32 %v143_v2, %v44_v21  ;;  %v26_v34 = vld [vmem:[%s254_s0 + $0x60] sm:$0xff]  ;;  %v28_v36 = vld [vmem:[%s254_s0 + $0x70] sm:$0xff]  ;;  %v29_v41 = vld [vmem:[%s254_s0 + $0x78] sm:$0xff] }
   0x7   :  { %v76_v23 = vmax.f32 %v60_v13, 0.0  ;;  %v64_v24 = vadd.f32 %v143_v2, %v41_v14  ;;  %v77_v30 = vmax.f32 %v61_v18, 0.0  ;;  %v78_v31 = vmax.f32 %v62_v19, 0.0 }
   0x8   :  { %v79_v32 = vmax.f32 %v63_v20, 0.0  ;;  %v81_v38 = vmax.f32 %v65_v25, 0.0  ;;  %v82_v39 = vmax.f32 %v66_v26, 0.0  ;;  %v45_v40 = vmul.f32 %v112_v1, %v22_v22 }
   0x9   :  { %92 = vst [vmem:[%s257_s3] sm:$0xff] %v76_v23  ;;  %v80_v37 = vmax.f32 %v64_v24, 0.0  ;;  %93 = vst [vmem:[%s257_s3 + $0x8] sm:$0xff] %v77_v30  ;;  %v83_v42 = vmax.f32 %v67_v33, 0.0  ;;  %v46_v43 = vmul.f32 %v112_v1, %v23_v27  ;;  %v47_v44 = vmul.f32 %v112_v1, %v24_v28 }
   0xa   :  { %94 = vst [vmem:[%s257_s3 + $0x10] sm:$0xff] %v78_v31  ;;  %95 = vst [vmem:[%s257_s3 + $0x18] sm:$0xff] %v79_v32  ;;  %v48_v45 = vmul.f32 %v112_v1, %v25_v29  ;;  %v68_v46 = vadd.f32 %v143_v2, %v45_v40  ;;  %v49_v47 = vmul.f32 %v112_v1, %v26_v34 }
   0xb   :  { %96 = vst [vmem:[%s257_s3 + $0x20] sm:$0xff] %v80_v37  ;;  %97 = vst [vmem:[%s257_s3 + $0x28] sm:$0xff] %v81_v38  ;;  %v50_v48 = vmul.f32 %v112_v1, %v27_v35  ;;  %v51_v49 = vmul.f32 %v112_v1, %v28_v36  ;;  %v69_v50 = vadd.f32 %v143_v2, %v46_v43 }
   0xc   :  { %98 = vst [vmem:[%s257_s3 + $0x30] sm:$0xff] %v82_v39  ;;  %99 = vst [vmem:[%s257_s3 + $0x38] sm:$0xff] %v83_v42  ;;  %v70_v51 = vadd.f32 %v143_v2, %v47_v44  ;;  %v71_v52 = vadd.f32 %v143_v2, %v48_v45  ;;  %v52_v53 = vmul.f32 %v112_v1, %v29_v41  ;;  %v84_v54 = vmax.f32 %v68_v46, 0.0 }
   0xd   :  { %v72_v55 = vadd.f32 %v143_v2, %v49_v47  ;;  %v73_v56 = vadd.f32 %v143_v2, %v50_v48  ;;  %v74_v57 = vadd.f32 %v143_v2, %v51_v49  ;;  %v85_v58 = vmax.f32 %v69_v50, 0.0 }
   0xe   :  { %v86_v59 = vmax.f32 %v70_v51, 0.0  ;;  %v87_v60 = vmax.f32 %v71_v52, 0.0  ;;  %v75_v61 = vadd.f32 %v143_v2, %v52_v53  ;;  %100 = vst [vmem:[%s257_s3 + $0x40] sm:$0xff] %v84_v54 }
   0xf   :  { %v88_v62 = vmax.f32 %v72_v55, 0.0  ;;  %v89_v63 = vmax.f32 %v73_v56, 0.0  ;;  %v90_v0 = vmax.f32 %v74_v57, 0.0  ;;  %101 = vst [vmem:[%s257_s3 + $0x48] sm:$0xff] %v85_v58 }
  0x10   :  { %102 = vst [vmem:[%s257_s3 + $0x50] sm:$0xff] %v86_v59  ;;  %103 = vst [vmem:[%s257_s3 + $0x58] sm:$0xff] %v87_v60  ;;  %v91_v1 = vmax.f32 %v75_v61, 0.0 }
  0x11   :  { %104 = vst [vmem:[%s257_s3 + $0x60] sm:$0xff] %v88_v62  ;;  %105 = vst [vmem:[%s257_s3 + $0x68] sm:$0xff] %v89_v63 }
  0x12   :  { %106 = vst [vmem:[%s257_s3 + $0x70] sm:$0xff] %v90_v0  ;;  %107 = vst [vmem:[%s257_s3 + $0x78] sm:$0xff] %v91_v1 }

// kernel: _lambda_.9
= control target key start
LH: loop header
LB: loop body
LE: loop exit
PB: predicated region body
PF: predicated region fallthrough
CT: control target
= control target key end

     0   :  { %s1410_s12 = smov 0   ;;  %s1412_s13 = smov 0   ;;  %s1728_s0 = inlined_call_operand.vmem [shape: f32[128,1152], index: 0, kind: input, shape index: {}]   ;;  %s1729_s1 = inlined_call_operand.vmem [shape: f32[1152,128], index: 1, kind: input, shape index: {}]   ;;  %s1730_s2 = inlined_call_operand.vmem [shape: f32[128,128], index: 2, kind: output, shape index: {0}]   ;;  %s1731_s3 = inlined_call_operand.vmem [shape: f32[1,2,128], index: 3, kind: output, shape index: {1}]  }
   0x1   :  { %s1414_s14 = smov 0   ;;  %s1416_s15 = smov 0  }
   0x2   :  { %s1418_s16 = smov 0  }
   0x3 LB: > { %s26_s17 = sadd.s32 1, %s1383_s15  ;;  %p49_p1 = scmp.ne.s32.totalorder %s1375_s13, %s1371_s12  ;;  %s1387_s16 = sphi %s1418_s16, %s14_s16   ;;  %s1383_s15 = sphi %s1416_s15, %s1735_s15   ;;  %s1379_s14 = sphi %s1414_s14, %s1734_s14   ;;  %s1375_s13 = sphi %s1412_s13, %s1733_s13   ;;  %s1371_s12 = sphi %s1410_s12, %s1732_s12  }
   0x4   : > { %p27_p0 = scmp.ge.s32.totalorder %s26_s17, 3  ;;  %p50_p2 = scmp.eq.s32.totalorder %s1387_s16, 0 }
   0x5   : > { %s42_s19 = sadd.s32 1, %s1375_s13  ;;  %p1062_p5 = scmp.ge.s32.totalorder %s1387_s16, 3 }
   0x6   : > { %s1737_s17 = smov (%p27_p0, %s26_s17), 0  ;;  %p51_p3 = por %p50_p2, %p49_p1 }
   0x7   : > { %s38_s18 = ssub.s32 %s1383_s15, %s1737_s17  ;;  %159 = sbr.rel (%p1062_p5) target bundleno = 43 (0x2b), region = 16 }
   0x8   : > { %p40_p4 = scmp.eq.s32.totalorder %s38_s18, 0 }
   0xa   : > { %s1445_s20 = scalar_select %p40_p4, %s1375_s13, %s42_s19  }
   0xe   : > { %162 = sbr.rel (!%p51_p3) target bundleno = 43 (0x2b), region = 20  ;;  %s164_s21 = sand.u32 (%p51_p3), 1, %s1375_s13  }
   0xf   : > { %s1073_s22 = smul.u32 (%p51_p3), 24, %s1383_s15 }
  0x10   : > { %s1306_s23 = smul.u32 (%p51_p3), 384, %s164_s21 }
  0x11   : > { %s1453_s26 = scalar_lea.vmem (%p51_p3), %s1728_s0, %s1073_s22 }
  0x12   : > { %v185_v0 = vld [vmem:[%s1453_s26] sm:$0xff] (%p51_p3)  ;;  %v187_v1 = vld [vmem:[%s1453_s26 + $0x8] sm:$0xff] (%p51_p3)  ;;  %v189_v2 = vld [vmem:[%s1453_s26 + $0x10] sm:$0xff] (%p51_p3)  ;;  %s1458_s27 = scalar_lea.vmem (%p51_p3), [#allocation3], %s1306_s23 }
  0x13   : > { %186 = vst [vmem:[%s1458_s27] sm:$0xff] (%p51_p3), %v185_v0  ;;  %188 = vst [vmem:[%s1458_s27 + $0x8] sm:$0xff] (%p51_p3), %v187_v1  ;;  %v191_v3 = vld [vmem:[%s1453_s26 + $0x48] sm:$0xff] (%p51_p3)  ;;  %v193_v4 = vld [vmem:[%s1453_s26 + $0x50] sm:$0xff] (%p51_p3) }
  0x14   : > { %190 = vst [vmem:[%s1458_s27 + $0x10] sm:$0xff] (%p51_p3), %v189_v2  ;;  %v195_v5 = vld [vmem:[%s1453_s26 + $0x58] sm:$0xff] (%p51_p3)  ;;  %192 = vst [vmem:[%s1458_s27 + $0x18] sm:$0xff] (%p51_p3), %v191_v3  ;;  %v197_v6 = vld [vmem:[%s1453_s26 + $0x90] sm:$0xff] (%p51_p3) }
  0x15   : > { %194 = vst [vmem:[%s1458_s27 + $0x20] sm:$0xff] %v193_v4  ;;  %196 = vst [vmem:[%s1458_s27 + $0x28] sm:$0xff] %v195_v5  ;;  %v199_v7 = vld [vmem:[%s1453_s26 + $0x98] sm:$0xff]  ;;  %v201_v8 = vld [vmem:[%s1453_s26 + $0xa0] sm:$0xff] }
  0x16   : > { %198 = vst [vmem:[%s1458_s27 + $0x30] sm:$0xff] %v197_v6  ;;  %200 = vst [vmem:[%s1458_s27 + $0x38] sm:$0xff] %v199_v7  ;;  %v203_v9 = vld [vmem:[%s1453_s26 + $0xd8] sm:$0xff]  ;;  %v205_v10 = vld [vmem:[%s1453_s26 + $0xe0] sm:$0xff] }
  0x17   : > { %202 = vst [vmem:[%s1458_s27 + $0x40] sm:$0xff] %v201_v8  ;;  %v207_v11 = vld [vmem:[%s1453_s26 + $0xe8] sm:$0xff]  ;;  %204 = vst [vmem:[%s1458_s27 + $0x48] sm:$0xff] %v203_v9  ;;  %v209_v12 = vld [vmem:[%s1453_s26 + $0x120] sm:$0xff] }
  0x18   : > { %206 = vst [vmem:[%s1458_s27 + $0x50] sm:$0xff] %v205_v10  ;;  %208 = vst [vmem:[%s1458_s27 + $0x58] sm:$0xff] %v207_v11  ;;  %v211_v13 = vld [vmem:[%s1453_s26 + $0x128] sm:$0xff]  ;;  %v213_v14 = vld [vmem:[%s1453_s26 + $0x130] sm:$0xff] }
  0x19   : > { %210 = vst [vmem:[%s1458_s27 + $0x60] sm:$0xff] %v209_v12  ;;  %212 = vst [vmem:[%s1458_s27 + $0x68] sm:$0xff] %v211_v13  ;;  %v215_v15 = vld [vmem:[%s1453_s26 + $0x168] sm:$0xff]  ;;  %v217_v16 = vld [vmem:[%s1453_s26 + $0x170] sm:$0xff] }
  0x1a   : > { %214 = vst [vmem:[%s1458_s27 + $0x70] sm:$0xff] %v213_v14  ;;  %v219_v17 = vld [vmem:[%s1453_s26 + $0x178] sm:$0xff]  ;;  %216 = vst [vmem:[%s1458_s27 + $0x78] sm:$0xff] %v215_v15  ;;  %v221_v18 = vld [vmem:[%s1453_s26 + $0x1b0] sm:$0xff] }
  0x1b   : > { %218 = vst [vmem:[%s1458_s27 + $0x80] sm:$0xff] %v217_v16  ;;  %220 = vst [vmem:[%s1458_s27 + $0x88] sm:$0xff] %v219_v17  ;;  %v223_v19 = vld [vmem:[%s1453_s26 + $0x1b8] sm:$0xff]  ;;  %v225_v20 = vld [vmem:[%s1453_s26 + $0x1c0] sm:$0xff] }
  0x1c   : > { %222 = vst [vmem:[%s1458_s27 + $0x90] sm:$0xff] %v221_v18  ;;  %224 = vst [vmem:[%s1458_s27 + $0x98] sm:$0xff] %v223_v19  ;;  %v227_v21 = vld [vmem:[%s1453_s26 + $0x1f8] sm:$0xff]  ;;  %v229_v22 = vld [vmem:[%s1453_s26 + $0x200] sm:$0xff] }
  0x1d   : > { %226 = vst [vmem:[%s1458_s27 + $0xa0] sm:$0xff] %v225_v20  ;;  %v231_v23 = vld [vmem:[%s1453_s26 + $0x208] sm:$0xff]  ;;  %228 = vst [vmem:[%s1458_s27 + $0xa8] sm:$0xff] %v227_v21  ;;  %v233_v24 = vld [vmem:[%s1453_s26 + $0x240] sm:$0xff] }
  0x1e   : > { %230 = vst [vmem:[%s1458_s27 + $0xb0] sm:$0xff] %v229_v22  ;;  %232 = vst [vmem:[%s1458_s27 + $0xb8] sm:$0xff] %v231_v23  ;;  %v235_v25 = vld [vmem:[%s1453_s26 + $0x248] sm:$0xff]  ;;  %v237_v26 = vld [vmem:[%s1453_s26 + $0x250] sm:$0xff] }
  0x1f   : > { %234 = vst [vmem:[%s1458_s27 + $0xc0] sm:$0xff] %v233_v24  ;;  %236 = vst [vmem:[%s1458_s27 + $0xc8] sm:$0xff] %v235_v25  ;;  %v239_v27 = vld [vmem:[%s1453_s26 + $0x288] sm:$0xff]  ;;  %v241_v28 = vld [vmem:[%s1453_s26 + $0x290] sm:$0xff] }
  0x20   : > { %238 = vst [vmem:[%s1458_s27 + $0xd0] sm:$0xff] %v237_v26  ;;  %v243_v29 = vld [vmem:[%s1453_s26 + $0x298] sm:$0xff]  ;;  %240 = vst [vmem:[%s1458_s27 + $0xd8] sm:$0xff] %v239_v27  ;;  %v245_v30 = vld [vmem:[%s1453_s26 + $0x2d0] sm:$0xff] }
  0x21   : > { %242 = vst [vmem:[%s1458_s27 + $0xe0] sm:$0xff] %v241_v28  ;;  %244 = vst [vmem:[%s1458_s27 + $0xe8] sm:$0xff] %v243_v29  ;;  %v247_v31 = vld [vmem:[%s1453_s26 + $0x2d8] sm:$0xff]  ;;  %v249_v32 = vld [vmem:[%s1453_s26 + $0x2e0] sm:$0xff] }
  0x22   : > { %246 = vst [vmem:[%s1458_s27 + $0xf0] sm:$0xff] %v245_v30  ;;  %248 = vst [vmem:[%s1458_s27 + $0xf8] sm:$0xff] %v247_v31  ;;  %v251_v33 = vld [vmem:[%s1453_s26 + $0x318] sm:$0xff]  ;;  %v253_v34 = vld [vmem:[%s1453_s26 + $0x320] sm:$0xff] }
  0x23   : > { %250 = vst [vmem:[%s1458_s27 + $0x100] sm:$0xff] %v249_v32  ;;  %v255_v35 = vld [vmem:[%s1453_s26 + $0x328] sm:$0xff]  ;;  %252 = vst [vmem:[%s1458_s27 + $0x108] sm:$0xff] %v251_v33  ;;  %v257_v36 = vld [vmem:[%s1453_s26 + $0x360] sm:$0xff] }
  0x24   : > { %254 = vst [vmem:[%s1458_s27 + $0x110] sm:$0xff] %v253_v34  ;;  %256 = vst [vmem:[%s1458_s27 + $0x118] sm:$0xff] %v255_v35  ;;  %v259_v37 = vld [vmem:[%s1453_s26 + $0x368] sm:$0xff]  ;;  %v261_v38 = vld [vmem:[%s1453_s26 + $0x370] sm:$0xff] }
  0x25   : > { %258 = vst [vmem:[%s1458_s27 + $0x120] sm:$0xff] %v257_v36  ;;  %260 = vst [vmem:[%s1458_s27 + $0x128] sm:$0xff] %v259_v37  ;;  %v263_v39 = vld [vmem:[%s1453_s26 + $0x3a8] sm:$0xff]  ;;  %v265_v40 = vld [vmem:[%s1453_s26 + $0x3b0] sm:$0xff] }
  0x26   : > { %262 = vst [vmem:[%s1458_s27 + $0x130] sm:$0xff] %v261_v38  ;;  %v267_v41 = vld [vmem:[%s1453_s26 + $0x3b8] sm:$0xff]  ;;  %264 = vst [vmem:[%s1458_s27 + $0x138] sm:$0xff] %v263_v39  ;;  %v269_v42 = vld [vmem:[%s1453_s26 + $0x3f0] sm:$0xff] }
  0x27   : > { %266 = vst [vmem:[%s1458_s27 + $0x140] sm:$0xff] %v265_v40  ;;  %268 = vst [vmem:[%s1458_s27 + $0x148] sm:$0xff] %v267_v41  ;;  %v271_v43 = vld [vmem:[%s1453_s26 + $0x3f8] sm:$0xff]  ;;  %v273_v44 = vld [vmem:[%s1453_s26 + $0x400] sm:$0xff] }
  0x28   : > { %270 = vst [vmem:[%s1458_s27 + $0x150] sm:$0xff] %v269_v42  ;;  %272 = vst [vmem:[%s1458_s27 + $0x158] sm:$0xff] %v271_v43  ;;  %v275_v45 = vld [vmem:[%s1453_s26 + $0x438] sm:$0xff]  ;;  %v277_v46 = vld [vmem:[%s1453_s26 + $0x440] sm:$0xff] }
  0x29   : > { %274 = vst [vmem:[%s1458_s27 + $0x160] sm:$0xff] %v273_v44  ;;  %v279_v47 = vld [vmem:[%s1453_s26 + $0x448] sm:$0xff]  ;;  %276 = vst [vmem:[%s1458_s27 + $0x168] sm:$0xff] %v275_v45 }
  0x2a   : > { %278 = vst [vmem:[%s1458_s27 + $0x170] sm:$0xff] %v277_v46  ;;  %280 = vst [vmem:[%s1458_s27 + $0x178] sm:$0xff] %v279_v47 }
  0x2b PF: > { %p1064_p6 = scmp.ge.s32.totalorder %s1387_s16, 1  ;;  %p297_p7 = scmp.lt.s32.totalorder %s1387_s16, 4 }
  0x2d   : > { %p298_p8 = pnand %p1064_p6, %p297_p7 }
  0x2e   : > { %s304_s28 = sand.u32 (!%p298_p8), 1, %s1371_s12   ;;  %s347_s29 = smul.u32 (!%p298_p8), 48, %s1379_s14 }
  0x2f   : > { %301 = sbr.rel (%p298_p8) target bundleno = 413 (0x19d), region = 47  ;;  %p1066_p10 = scmp.ne.s32.totalorder (!%p298_p8), %s1379_s14, 0 }
  0x30   : > { %s1307_s30 = smul.u32 (!%p298_p8), 384, %s304_s28  ;;  %p348_p9 = scmp.lt.s32.totalorder (!%p298_p8), %s347_s29, 143 }
  0x32   : > { %s1562_s8 = scalar_lea.vmem (!%p298_p8), [#allocation3], %s1307_s30 }
  0x36   : > { %s1739_s29 = smov (!%p348_p9, %s347_s29), 143  ;;  %375 = sbr.rel (%p1066_p10) target bundleno = 64 (0x40), region = 55 }
  0x37   : > { %s1065_s4 = sshll.u32 %s1739_s29, 3  ;;  %v1389_v48 = vmov (!%p1066_p10), 0.0  }
  0x38   : > { %s1560_s7 = scalar_lea.vmem %s1729_s1, %s1065_s4  ;;  %376 = vst [vmem:[#allocation2] sm:$0xff] (!%p1066_p10), %v1389_v48  ;;  %377 = vst [vmem:[#allocation2 + $0x8] sm:$0xff] (!%p1066_p10), %v1389_v48 }
  0x39   : > { %378 = vst [vmem:[#allocation2 + $0x10] sm:$0xff] (!%p1066_p10), %v1389_v48  ;;  %379 = vst [vmem:[#allocation2 + $0x18] sm:$0xff] (!%p1066_p10), %v1389_v48 }
  0x3a   : > { %380 = vst [vmem:[#allocation2 + $0x20] sm:$0xff] (!%p1066_p10), %v1389_v48  ;;  %381 = vst [vmem:[#allocation2 + $0x28] sm:$0xff] (!%p1066_p10), %v1389_v48 }
  0x3b   : > { %382 = vst [vmem:[#allocation2 + $0x30] sm:$0xff] (!%p1066_p10), %v1389_v48  ;;  %383 = vst [vmem:[#allocation2 + $0x38] sm:$0xff] (!%p1066_p10), %v1389_v48 }
  0x3c   : > { %384 = vst [vmem:[#allocation2 + $0x40] sm:$0xff] (!%p1066_p10), %v1389_v48  ;;  %385 = vst [vmem:[#allocation2 + $0x48] sm:$0xff] (!%p1066_p10), %v1389_v48 }
  0x3d   : > { %386 = vst [vmem:[#allocation2 + $0x50] sm:$0xff] %v1389_v48  ;;  %387 = vst [vmem:[#allocation2 + $0x58] sm:$0xff] %v1389_v48 }
  0x3e   : > { %388 = vst [vmem:[#allocation2 + $0x60] sm:$0xff] %v1389_v48  ;;  %389 = vst [vmem:[#allocation2 + $0x68] sm:$0xff] %v1389_v48 }
  0x3f   : > { %390 = vst [vmem:[#allocation2 + $0x70] sm:$0xff] %v1389_v48  ;;  %391 = vst [vmem:[#allocation2 + $0x78] sm:$0xff] %v1389_v48 }
  0x40 PF: > { %v472_v49 = vld [vmem:[%s1560_s7 + $0x80] sm:$0xff]  ;;  %v473_v50 = vld [vmem:[%s1560_s7 + $0x88] sm:$0xff]  ;;  %v474_v58 = vld [vmem:[%s1560_s7 + $0x90] sm:$0xff]  ;;  %p1067_p11 = scmp.ne.s32.totalorder %s1379_s14, 2 }
  0x41   : > { %v456_v51 = vld [vmem:[%s1560_s7] sm:$0xff]  ;;  %v1242_v52 = vpack.c.bf16 %v473_v50, %v472_v49  ;;  %v457_v53 = vld [vmem:[%s1560_s7 + $0x8] sm:$0xff]  ;;  %v475_v59 = vld [vmem:[%s1560_s7 + $0x98] sm:$0xff]  ;;  %vm920_vm0 = vcmask (!%p1067_p11), 1040384  }
  0x42   : > { %v488_v54 = vld [vmem:[%s1560_s7 + $0x100] sm:$0xff]  ;;  %v489_v55 = vld [vmem:[%s1560_s7 + $0x108] sm:$0xff]  ;;  %v1244_v56 = vpack.c.bf16 %v457_v53, %v456_v51  ;;  %v458_v60 = vld [vmem:[%s1560_s7 + $0x10] sm:$0xff]  ;;  %v1246_v61 = vpack.c.bf16 %v475_v59, %v474_v58 }
  0x43   : > { %v1274_v57 = vpack.c.bf16 %v489_v55, %v488_v54  ;;  %1243 = vmatprep.subr.bf16.mxu0 %v1242_v52  ;;  %v459_v62 = vld [vmem:[%s1560_s7 + $0x18] sm:$0xff]  ;;  %v490_v63 = vld [vmem:[%s1560_s7 + $0x110] sm:$0xff]  ;;  %v476_v3 = vld [vmem:[%s1560_s7 + $0xa0] sm:$0xff] }
  0x44   : > { %v491_v0 = vld [vmem:[%s1560_s7 + $0x118] sm:$0xff]  ;;  %1245 = vmatpush3.bf16.msra.mxu0 %v1244_v56  ;;  %v1248_v1 = vpack.c.bf16 %v459_v62, %v458_v60  ;;  %v477_v4 = vld [vmem:[%s1560_s7 + $0xa8] sm:$0xff]  ;;  %v460_v5 = vld [vmem:[%s1560_s7 + $0x20] sm:$0xff] }
  0x45   : > { %1275 = vmatprep.subr.bf16.mxu1 %v1274_v57  ;;  %v1278_v2 = vpack.c.bf16 %v491_v0, %v490_v63  ;;  %1247 = vmatprep.subr.bf16.mxu0 %v1246_v61  ;;  %v1250_v6 = vpack.c.bf16 %v477_v4, %v476_v3  ;;  %v461_v7 = vld [vmem:[%s1560_s7 + $0x28] sm:$0xff]  ;;  %v492_v8 = vld [vmem:[%s1560_s7 + $0x120] sm:$0xff]  ;;  %v478_v11 = vld [vmem:[%s1560_s7 + $0xb0] sm:$0xff] }
  0x46   : > { %1277 = vmatpush3.bf16.msra.mxu1 %v1274_v57  ;;  %v493_v9 = vld [vmem:[%s1560_s7 + $0x128] sm:$0xff]  ;;  %v479_v12 = vld [vmem:[%s1560_s7 + $0xb8] sm:$0xff]  ;;  %v494_v13 = vld [vmem:[%s1560_s7 + $0x130] sm:$0xff]  ;;  %v1252_v15 = vpack.c.bf16 %v461_v7, %v460_v5 }
  0x47   : > { %1279 = vmatprep.subr.bf16.mxu1 %v1278_v2  ;;  %v1282_v10 = vpack.c.bf16 %v493_v9, %v492_v8  ;;  %v495_v14 = vld [vmem:[%s1560_s7 + $0x138] sm:$0xff]  ;;  %v1254_v16 = vpack.c.bf16 %v479_v12, %v478_v11  ;;  %v462_v17 = vld [vmem:[%s1560_s7 + $0x30] sm:$0xff]  ;;  %v480_v20 = vld [vmem:[%s1560_s7 + $0xc0] sm:$0xff] }
  0x48   : > { %1249 = vmatpush3.bf16.msra.mxu0 %v1248_v1  ;;  %v463_v18 = vld [vmem:[%s1560_s7 + $0x38] sm:$0xff]  ;;  %v1286_v19 = vpack.c.bf16 %v495_v14, %v494_v13  ;;  %v481_v21 = vld [vmem:[%s1560_s7 + $0xc8] sm:$0xff]  ;;  %v496_v22 = vld [vmem:[%s1560_s7 + $0x140] sm:$0xff] }
  0x49   : > { %1251 = vmatprep.subr.bf16.mxu0 %v1250_v6  ;;  %v497_v23 = vld [vmem:[%s1560_s7 + $0x148] sm:$0xff]  ;;  %v1256_v24 = vpack.c.bf16 %v463_v18, %v462_v17  ;;  %v1258_v25 = vpack.c.bf16 %v481_v21, %v480_v20  ;;  %v464_v26 = vld [vmem:[%s1560_s7 + $0x40] sm:$0xff]  ;;  %v482_v29 = vld [vmem:[%s1560_s7 + $0xd0] sm:$0xff] }
  0x4a   : > { %1281 = vmatpush3.bf16.msra.mxu1 %v1278_v2  ;;  %v465_v27 = vld [vmem:[%s1560_s7 + $0x48] sm:$0xff]  ;;  %v1290_v28 = vpack.c.bf16 %v497_v23, %v496_v22  ;;  %v483_v30 = vld [vmem:[%s1560_s7 + $0xd8] sm:$0xff]  ;;  %v498_v31 = vld [vmem:[%s1560_s7 + $0x150] sm:$0xff] }
  0x4b   : > { %1283 = vmatprep.subr.bf16.mxu1 %v1282_v10  ;;  %v499_v32 = vld [vmem:[%s1560_s7 + $0x158] sm:$0xff]  ;;  %v1260_v33 = vpack.c.bf16 %v465_v27, %v464_v26  ;;  %v409_v34 = vld [vmem:[%s1562_s8 + $0x8] sm:$0xff]  ;;  %v410_v35 = vld [vmem:[%s1562_s8 + $0x10] sm:$0xff]  ;;  %v1262_v36 = vpack.c.bf16 %v483_v30, %v482_v29 }
  0x4c   : > { %1253 = vmatpush3.bf16.msra.mxu0 %v1252_v15  ;;  %v466_v37 = vld [vmem:[%s1560_s7 + $0x50] sm:$0xff]  ;;  %v467_v38 = vld [vmem:[%s1560_s7 + $0x58] sm:$0xff]  ;;  %v1294_v39 = vpack.c.bf16 %v499_v32, %v498_v31  ;;  %v484_v40 = vld [vmem:[%s1560_s7 + $0xe0] sm:$0xff]  ;;  %568 = vmatprep.mubr.f32.mxu0 %v409_v34 }
  0x4d   : > { %1255 = vmatprep.subr.bf16.mxu0 %v1254_v16  ;;  %v485_v41 = vld [vmem:[%s1560_s7 + $0xe8] sm:$0xff]  ;;  %v500_v42 = vld [vmem:[%s1560_s7 + $0x160] sm:$0xff]  ;;  %1218 = vmatprep.mubr.f32.mxu1 %v410_v35  ;;  %v1264_v44 = vpack.c.bf16 %v467_v38, %v466_v37  ;;  %v486_v49 = vld [vmem:[%s1560_s7 + $0xf0] sm:$0xff] }
  0x4e   : > { %1285 = vmatpush3.bf16.msra.mxu1 %v1282_v10  ;;  %v501_v43 = vld [vmem:[%s1560_s7 + $0x168] sm:$0xff]  ;;  %v1266_v45 = vpack.c.bf16 %v485_v41, %v484_v40  ;;  %v468_v46 = vld [vmem:[%s1560_s7 + $0x60] sm:$0xff]  ;;  %v487_v50 = vld [vmem:[%s1560_s7 + $0xf8] sm:$0xff] }
  0x4f   : > { %1287 = vmatprep.subr.bf16.mxu1 %v1286_v19  ;;  %v469_v47 = vld [vmem:[%s1560_s7 + $0x68] sm:$0xff]  ;;  %v1298_v48 = vpack.c.bf16 %v501_v43, %v500_v42  ;;  %v502_v51 = vld [vmem:[%s1560_s7 + $0x170] sm:$0xff]  ;;  %v503_v52 = vld [vmem:[%s1560_s7 + $0x178] sm:$0xff]  ;;  %v1270_v54 = vpack.c.bf16 %v487_v50, %v486_v49 }
  0x50   : > { %1257 = vmatpush3.bf16.msra.mxu0 %v1256_v24  ;;  %v1268_v53 = vpack.c.bf16 %v469_v47, %v468_v46  ;;  %v470_v55 = vld [vmem:[%s1560_s7 + $0x70] sm:$0xff]  ;;  %v471_v56 = vld [vmem:[%s1560_s7 + $0x78] sm:$0xff]  ;;  %v1302_v57 = vpack.c.bf16 %v503_v52, %v502_v51  ;;  %v408_v59 = vld [vmem:[%s1562_s8] sm:$0xff] }
  0x51   : > { %1259 = vmatprep.subr.bf16.mxu0 %v1258_v25  ;;  %v1272_v58 = vpack.c.bf16 %v471_v56, %v470_v55  ;;  %v413_v60 = vld [vmem:[%s1562_s8 + $0x28] sm:$0xff]  ;;  %v412_v61 = vld [vmem:[%s1562_s8 + $0x20] sm:$0xff]  ;;  %v411_v63 = vld [vmem:[%s1562_s8 + $0x18] sm:$0xff] }
  0x52   : > { %1289 = vmatpush3.bf16.msra.mxu1 %v1286_v19  ;;  %v416_v62 = vld [vmem:[%s1562_s8 + $0x40] sm:$0xff]  ;;  %v415_v0 = vld [vmem:[%s1562_s8 + $0x38] sm:$0xff]  ;;  %v422_v2 = vld [vmem:[%s1562_s8 + $0x70] sm:$0xff] }
  0x53   : > { %1291 = vmatprep.subr.bf16.mxu1 %v1290_v28  ;;  %v419_v1 = vld [vmem:[%s1562_s8 + $0x58] sm:$0xff]  ;;  %v414_v3 = vld [vmem:[%s1562_s8 + $0x30] sm:$0xff]  ;;  %v425_v5 = vld [vmem:[%s1562_s8 + $0x88] sm:$0xff] }
  0x54   : > { %1261 = vmatpush3.bf16.msra.mxu0 %v1260_v33  ;;  %v418_v4 = vld [vmem:[%s1562_s8 + $0x50] sm:$0xff]  ;;  %v428_v6 = vld [vmem:[%s1562_s8 + $0xa0] sm:$0xff]  ;;  %v417_v7 = vld [vmem:[%s1562_s8 + $0x48] sm:$0xff] }
  0x55   : > { %1263 = vmatprep.subr.bf16.mxu0 %v1262_v36  ;;  %v421_v8 = vld [vmem:[%s1562_s8 + $0x68] sm:$0xff]  ;;  %v431_v9 = vld [vmem:[%s1562_s8 + $0xb8] sm:$0xff]  ;;  %v434_v10 = vld [vmem:[%s1562_s8 + $0xd0] sm:$0xff] }
  0x56   : > { %1293 = vmatpush3.bf16.msra.mxu1 %v1290_v28  ;;  %v420_v11 = vld [vmem:[%s1562_s8 + $0x60] sm:$0xff]  ;;  %v437_v13 = vld [vmem:[%s1562_s8 + $0xe8] sm:$0xff]  ;;  %v423_v15 = vld [vmem:[%s1562_s8 + $0x78] sm:$0xff] }
  0x57   : > { %1295 = vmatprep.subr.bf16.mxu1 %v1294_v39  ;;  %v424_v12 = vld [vmem:[%s1562_s8 + $0x80] sm:$0xff]  ;;  %v427_v16 = vld [vmem:[%s1562_s8 + $0x98] sm:$0xff]  ;;  %v446_v18 = vld [vmem:[%s1562_s8 + $0x130] sm:$0xff] }
  0x58   : > { %1265 = vmatpush3.bf16.msra.mxu0 %v1264_v44  ;;  %v440_v14 = vld [vmem:[%s1562_s8 + $0x100] sm:$0xff]  ;;  %v443_v17 = vld [vmem:[%s1562_s8 + $0x118] sm:$0xff]  ;;  %v426_v19 = vld [vmem:[%s1562_s8 + $0x90] sm:$0xff] }
  0x59   : > { %1267 = vmatprep.subr.bf16.mxu0 %v1266_v45  ;;  %v430_v20 = vld [vmem:[%s1562_s8 + $0xb0] sm:$0xff]  ;;  %v449_v21 = vld [vmem:[%s1562_s8 + $0x148] sm:$0xff]  ;;  %v452_v22 = vld [vmem:[%s1562_s8 + $0x160] sm:$0xff] }
  0x5a   : > { %1297 = vmatpush3.bf16.msra.mxu1 %v1294_v39  ;;  %v429_v23 = vld [vmem:[%s1562_s8 + $0xa8] sm:$0xff]  ;;  %v455_v25 = vld [vmem:[%s1562_s8 + $0x178] sm:$0xff]  ;;  %v432_v26 = vld [vmem:[%s1562_s8 + $0xc0] sm:$0xff] }
  0x5b   : > { %1299 = vmatprep.subr.bf16.mxu1 %v1298_v48  ;;  %v433_v24 = vld [vmem:[%s1562_s8 + $0xc8] sm:$0xff]  ;;  %v436_v27 = vld [vmem:[%s1562_s8 + $0xe0] sm:$0xff]  ;;  %v435_v28 = vld [vmem:[%s1562_s8 + $0xd8] sm:$0xff] }
  0x5c   : > { %1269 = vmatpush3.bf16.msra.mxu0 %v1268_v53  ;;  %v439_v29 = vld [vmem:[%s1562_s8 + $0xf8] sm:$0xff]  ;;  %v438_v30 = vld [vmem:[%s1562_s8 + $0xf0] sm:$0xff]  ;;  %v441_v32 = vld [vmem:[%s1562_s8 + $0x108] sm:$0xff] }
  0x5d   : > { %1271 = vmatprep.subr.bf16.mxu0 %v1270_v54  ;;  %v442_v31 = vld [vmem:[%s1562_s8 + $0x110] sm:$0xff]  ;;  %v445_v33 = vld [vmem:[%s1562_s8 + $0x128] sm:$0xff]  ;;  %v444_v34 = vld [vmem:[%s1562_s8 + $0x120] sm:$0xff] }
  0x5e   : > { %1301 = vmatpush3.bf16.msra.mxu1 %v1298_v48  ;;  %v448_v35 = vld [vmem:[%s1562_s8 + $0x140] sm:$0xff]  ;;  %v447_v36 = vld [vmem:[%s1562_s8 + $0x138] sm:$0xff]  ;;  %v450_v38 = vld [vmem:[%s1562_s8 + $0x150] sm:$0xff] }
  0x5f   : > { %1303 = vmatprep.subr.bf16.mxu1 %v1302_v57  ;;  %v451_v37 = vld [vmem:[%s1562_s8 + $0x158] sm:$0xff]  ;;  %v454_v39 = vld [vmem:[%s1562_s8 + $0x170] sm:$0xff]  ;;  %v453_v40 = vld [vmem:[%s1562_s8 + $0x168] sm:$0xff] }
  0x60   : > { %1273 = vmatpush3.bf16.msra.mxu0 %v1272_v58  ;;  %v392_v46 = vld [vmem:[#allocation2] sm:$0xff]  ;;  %v393_v54 = vld [vmem:[#allocation2 + $0x8] sm:$0xff] }
  0x62   : > { %1305 = vmatpush3.bf16.msra.mxu1 %v1302_v57 }
  0x63   : > { %569 = vmatmul.mubr.f32.vlgmr.msra.gmra.mrb[0].mxu0 %v408_v59 }
  0x64   : > { %573 = vmatprep.mubr.f32.mxu0 %v412_v61 }
  0x65   : > { %1219 = vmatmul.mubr.f32.vlgmr.msra.gmra.mrb[0].mxu1 %v413_v60 }
  0x66   : > { %1221 = vmatprep.mubr.f32.mxu1 %v416_v62  ;;  %v394_v62 = vld [vmem:[#allocation2 + $0x10] sm:$0xff] }
  0x67   : > { %574 = vmatmul.mubr.f32.gmra.mrb[2].mxu0 %v411_v63 }
  0x68   : > { %578 = vmatprep.mubr.f32.mxu0 %v415_v0 }
  0x69   : > { %1222 = vmatmul.mubr.f32.gmra.mrb[2].mxu1 %v419_v1 }
  0x6a   : > { %1224 = vmatprep.mubr.f32.mxu1 %v422_v2 }
  0x6b   : > { %579 = vmatmul.mubr.f32.gmra.mrb[4].mxu0 %v414_v3 }
  0x6c   : > { %583 = vmatprep.mubr.f32.mxu0 %v418_v4 }
  0x6d   : > { %1225 = vmatmul.mubr.f32.gmra.mrb[4].mxu1 %v425_v5 }
  0x6e   : > { %1227 = vmatprep.mubr.f32.mxu1 %v428_v6  ;;  %v395_v6 = vld [vmem:[#allocation2 + $0x18] sm:$0xff] }
  0x6f   : > { %584 = vmatmul.mubr.f32.gmra.mrb[6].mxu0 %v417_v7 }
  0x70   : > { %588 = vmatprep.mubr.f32.mxu0 %v421_v8 }
  0x71   : > { %1228 = vmatmul.mubr.f32.gmra.mrb[6].mxu1 %v431_v9 }
  0x72   : > { %1230 = vmatprep.mubr.f32.mxu1 %v434_v10 }
  0x73   : > { %589 = vmatmul.mubr.f32.gmra.mrb[8].mxu0 %v420_v11 }
  0x74   : > { %593 = vmatprep.mubr.f32.mxu0 %v424_v12 }
  0x75   : > { %1231 = vmatmul.mubr.f32.gmra.mrb[8].mxu1 %v437_v13 }
  0x76   : > { %1233 = vmatprep.mubr.f32.mxu1 %v440_v14  ;;  %v396_v14 = vld [vmem:[#allocation2 + $0x20] sm:$0xff] }
  0x77   : > { %594 = vmatmul.mubr.f32.gmra.mrb[10].mxu0 %v423_v15 }
  0x78   : > { %598 = vmatprep.mubr.f32.mxu0 %v427_v16 }
  0x79   : > { %1234 = vmatmul.mubr.f32.gmra.mrb[10].mxu1 %v443_v17 }
  0x7a   : > { %1236 = vmatprep.mubr.f32.mxu1 %v446_v18 }
  0x7b   : > { %599 = vmatmul.mubr.f32.gmra.mrb[12].mxu0 %v426_v19 }
  0x7c   : > { %603 = vmatprep.mubr.f32.mxu0 %v430_v20 }
  0x7d   : > { %1237 = vmatmul.mubr.f32.gmra.mrb[12].mxu1 %v449_v21 }
  0x7e   : > { %1239 = vmatprep.mubr.f32.mxu1 %v452_v22  ;;  %v397_v22 = vld [vmem:[#allocation2 + $0x28] sm:$0xff] }
  0x7f   : > { %604 = vmatmul.mubr.f32.gmra.mrb[14].mxu0 %v429_v23 }
  0x80   : > { %608 = vmatprep.mubr.f32.mxu0 %v433_v24 }
  0x81   : > { %1240 = vmatmul.mubr.f32.gmra.mrb[14].mxu1 %v455_v25 }
  0x83   : > { %609 = vmatmul.mubr.f32.gmra.mrb[16].mxu0 %v432_v26 }
  0x84   : > { %613 = vmatprep.mubr.f32.mxu0 %v436_v27 }
  0x87   : > { %614 = vmatmul.mubr.f32.gmra.mrb[18].mxu0 %v435_v28 }
  0x88   : > { %618 = vmatprep.mubr.f32.mxu0 %v439_v29 }
  0x8b   : > { %619 = vmatmul.mubr.f32.gmra.mrb[20].mxu0 %v438_v30  ;;  %v398_v30 = vld [vmem:[#allocation2 + $0x30] sm:$0xff] }
  0x8c   : > { %623 = vmatprep.mubr.f32.mxu0 %v442_v31 }
  0x8f   : > { %624 = vmatmul.mubr.f32.gmra.mrb[22].mxu0 %v441_v32 }
  0x90   : > { %628 = vmatprep.mubr.f32.mxu0 %v445_v33 }
  0x93   : > { %629 = vmatmul.mubr.f32.gmra.mrb[24].mxu0 %v444_v34 }
  0x94   : > { %633 = vmatprep.mubr.f32.mxu0 %v448_v35 }
  0x97   : > { %634 = vmatmul.mubr.f32.gmra.mrb[26].mxu0 %v447_v36 }
  0x98   : > { %638 = vmatprep.mubr.f32.mxu0 %v451_v37 }
  0x9b   : > { %639 = vmatmul.mubr.f32.gmra.mrb[28].mxu0 %v450_v38  ;;  %v399_v38 = vld [vmem:[#allocation2 + $0x38] sm:$0xff] }
  0x9c   : > { %643 = vmatprep.mubr.f32.mxu0 %v454_v39 }
  0x9f   : > { %644 = vmatmul.mubr.f32.gmra.mrb[30].mxu0 %v453_v40 }
 0x136   : > { %v1106_v41 = vpop.f32.mrb[0].mxu0 }
 0x137   : > { %v1107_v42 = vpop.f32.mrb[1].mxu0 }
 0x138   : > { %v1220_v43 = vpop.f32.mrb[0].mxu1  ;;  %v1108_v44 = vadd.f32 %v1107_v42, %v1106_v41 }
 0x139   : > { %v715_v45 = vpop.f32.mrb[1].mxu1 }
 0x13a   : > { %v716_v47 = vadd.f32 %v1108_v44, %v715_v45  ;;  %v1109_v48 = vpop.f32.mrb[2].mxu0  ;;  %v400_v44 = vld [vmem:[#allocation2 + $0x40] sm:$0xff] }
 0x13b   : > { %v1110_v49 = vpop.f32.mrb[3].mxu0 }
 0x13c   : > { %v1223_v50 = vpop.f32.mrb[2].mxu1  ;;  %v794_v51 = vadd.f32 %v716_v47, %v392_v46  ;;  %v1111_v52 = vadd.f32 %v1110_v49, %v1109_v48 }
 0x13d   : > { %v725_v53 = vpop.f32.mrb[3].mxu1 }
 0x13e   : > { %810 = vst [vmem:[#allocation2] sm:$0xff] %v794_v51  ;;  %v721_v55 = vadd.f32 %v1220_v43, %v1111_v52  ;;  %v1112_v56 = vpop.f32.mrb[4].mxu0 }
 0x13f   : > { %v1113_v57 = vpop.f32.mrb[5].mxu0 }
 0x140   : > { %v1226_v58 = vpop.f32.mrb[4].mxu1  ;;  %v795_v59 = vadd.f32 %v721_v55, %v393_v54  ;;  %v1114_v60 = vadd.f32 %v1113_v57, %v1112_v56  ;;  %v402_v56 = vld [vmem:[#allocation2 + $0x50] sm:$0xff] }
 0x141   : > { %v735_v61 = vpop.f32.mrb[5].mxu1 }
 0x142   : > { %811 = vst [vmem:[#allocation2 + $0x8] sm:$0xff] %v795_v59  ;;  %v726_v63 = vadd.f32 %v1114_v60, %v725_v53  ;;  %v1115_v0 = vpop.f32.mrb[6].mxu0 }
 0x143   : > { %v1116_v1 = vpop.f32.mrb[7].mxu0 }
 0x144   : > { %v1229_v2 = vpop.f32.mrb[6].mxu1  ;;  %v796_v3 = vadd.f32 %v726_v63, %v394_v62  ;;  %v1117_v4 = vadd.f32 %v1116_v1, %v1115_v0  ;;  %v403_v62 = vld [vmem:[#allocation2 + $0x58] sm:$0xff] }
 0x145   : > { %v745_v5 = vpop.f32.mrb[7].mxu1 }
 0x146   : > { %812 = vst [vmem:[#allocation2 + $0x10] sm:$0xff] %v796_v3  ;;  %v731_v7 = vadd.f32 %v1223_v50, %v1117_v4  ;;  %v1118_v8 = vpop.f32.mrb[8].mxu0  ;;  %v401_v50 = vld [vmem:[#allocation2 + $0x48] sm:$0xff]  ;;  %v404_v4 = vld [vmem:[#allocation2 + $0x60] sm:$0xff] }
 0x147   : > { %v1119_v9 = vpop.f32.mrb[9].mxu0 }
 0x148   : > { %v1232_v10 = vpop.f32.mrb[8].mxu1  ;;  %v797_v11 = vadd.f32 %v731_v7, %v395_v6  ;;  %v1120_v12 = vadd.f32 %v1119_v9, %v1118_v8 }
 0x149   : > { %v755_v13 = vpop.f32.mrb[9].mxu1 }
 0x14a   : > { %813 = vst [vmem:[#allocation2 + $0x18] sm:$0xff] %v797_v11  ;;  %v736_v15 = vadd.f32 %v1120_v12, %v735_v61  ;;  %v1121_v16 = vpop.f32.mrb[10].mxu0 }
 0x14b   : > { %v1122_v17 = vpop.f32.mrb[11].mxu0 }
 0x14c   : > { %v1235_v18 = vpop.f32.mrb[10].mxu1  ;;  %v798_v19 = vadd.f32 %v736_v15, %v396_v14  ;;  %v1123_v20 = vadd.f32 %v1122_v17, %v1121_v16  ;;  %v406_v16 = vld [vmem:[#allocation2 + $0x70] sm:$0xff] }
 0x14d   : > { %v765_v21 = vpop.f32.mrb[11].mxu1 }
 0x14e   : > { %814 = vst [vmem:[#allocation2 + $0x20] sm:$0xff] %v798_v19  ;;  %v741_v23 = vadd.f32 %v1226_v58, %v1123_v20  ;;  %v1124_v24 = vpop.f32.mrb[12].mxu0 }
 0x14f   : > { %v1125_v25 = vpop.f32.mrb[13].mxu0 }
 0x150   : > { %v1238_v26 = vpop.f32.mrb[12].mxu1  ;;  %v799_v27 = vadd.f32 %v741_v23, %v397_v22  ;;  %v1126_v28 = vadd.f32 %v1125_v25, %v1124_v24  ;;  %v407_v22 = vld [vmem:[#allocation2 + $0x78] sm:$0xff]  ;;  %v830_v25 = vld [vmem:[#allocation2] sm:$0xff] (!%p1067_p11) }
 0x151   : > { %v775_v29 = vpop.f32.mrb[13].mxu1  ;;  %846 = vst [vmem:[%s1730_s2] sm:$0xff] (!%p1067_p11), %v830_v25 }
 0x152   : > { %815 = vst [vmem:[#allocation2 + $0x28] sm:$0xff] %v799_v27  ;;  %v746_v31 = vadd.f32 %v1126_v28, %v745_v5  ;;  %v1127_v32 = vpop.f32.mrb[14].mxu0  ;;  %v832_v27 = vld [vmem:[#allocation2 + $0x10] sm:$0xff] (!%p1067_p11)  ;;  %v883_v28 = vmul.f32 (!%p1067_p11), %v830_v25, %v830_v25 }
 0x153   : > { %v1128_v33 = vpop.f32.mrb[15].mxu0  ;;  %848 = vst [vmem:[%s1730_s2 + $0x10] sm:$0xff] (!%p1067_p11), %v832_v27 }
 0x154   : > { %v1241_v34 = vpop.f32.mrb[14].mxu1  ;;  %v800_v35 = vadd.f32 %v746_v31, %v398_v30  ;;  %v1129_v36 = vadd.f32 %v1128_v33, %v1127_v32  ;;  %v885_v31 = vmul.f32 (!%p1067_p11), %v832_v27, %v832_v27  ;;  %v833_v32 = vld [vmem:[#allocation2 + $0x18] sm:$0xff] (!%p1067_p11) }
 0x155   : > { %v785_v37 = vpop.f32.mrb[15].mxu1  ;;  %v834_v33 = vld [vmem:[#allocation2 + $0x20] sm:$0xff] (!%p1067_p11)  ;;  %849 = vst [vmem:[%s1730_s2 + $0x18] sm:$0xff] (!%p1067_p11), %v833_v32 }
 0x156   : > { %816 = vst [vmem:[#allocation2 + $0x30] sm:$0xff] %v800_v35  ;;  %v751_v39 = vadd.f32 %v1229_v2, %v1129_v36  ;;  %v1130_v40 = vpop.f32.mrb[16].mxu0  ;;  %850 = vst [vmem:[%s1730_s2 + $0x20] sm:$0xff] (!%p1067_p11), %v834_v33 }
 0x157   : > { %v1131_v41 = vpop.f32.mrb[17].mxu0 }
 0x158   : > { %v801_v42 = vadd.f32 %v751_v39, %v399_v38  ;;  %v1132_v43 = vadd.f32 %v1131_v41, %v1130_v40  ;;  %v886_v40 = vmul.f32 (!%p1067_p11), %v833_v32, %v833_v32 }
 0x15a   : > { %817 = vst [vmem:[#allocation2 + $0x38] sm:$0xff] %v801_v42  ;;  %v756_v45 = vadd.f32 %v1132_v43, %v755_v13  ;;  %v1133_v46 = vpop.f32.mrb[18].mxu0 }
 0x15b   : > { %v1134_v47 = vpop.f32.mrb[19].mxu0 }
 0x15c   : > { %v802_v48 = vadd.f32 %v756_v45, %v400_v44  ;;  %v1135_v49 = vadd.f32 %v1134_v47, %v1133_v46 }
 0x15d   : > { %v836_v35 = vld [vmem:[#allocation2 + $0x30] sm:$0xff] (!%p1067_p11) }
 0x15e   : > { %818 = vst [vmem:[#allocation2 + $0x40] sm:$0xff] %v802_v48  ;;  %v761_v51 = vadd.f32 %v1232_v10, %v1135_v49  ;;  %v1136_v52 = vpop.f32.mrb[20].mxu0  ;;  %v405_v10 = vld [vmem:[#allocation2 + $0x68] sm:$0xff]  ;;  %852 = vst [vmem:[%s1730_s2 + $0x30] sm:$0xff] (!%p1067_p11), %v836_v35  ;;  %v887_v49 = vmul.f32 (!%p1067_p11), %v834_v33, %v834_v33 }
 0x15f   : > { %v1137_v53 = vpop.f32.mrb[21].mxu0 }
 0x160   : > { %v803_v54 = vadd.f32 %v761_v51, %v401_v50  ;;  %v1138_v55 = vadd.f32 %v1137_v53, %v1136_v52 }
 0x161   : > { %v837_v36 = vld [vmem:[#allocation2 + $0x38] sm:$0xff] (!%p1067_p11) }
 0x162   : > { %819 = vst [vmem:[#allocation2 + $0x48] sm:$0xff] %v803_v54  ;;  %v766_v57 = vadd.f32 %v1138_v55, %v765_v21  ;;  %v1139_v58 = vpop.f32.mrb[22].mxu0  ;;  %853 = vst [vmem:[%s1730_s2 + $0x38] sm:$0xff] (!%p1067_p11), %v837_v36 }
 0x163   : > { %v1140_v59 = vpop.f32.mrb[23].mxu0 }
 0x164   : > { %v804_v60 = vadd.f32 %v766_v57, %v402_v56  ;;  %v1141_v61 = vadd.f32 %v1140_v59, %v1139_v58  ;;  %v889_v56 = vmul.f32 (!%p1067_p11), %v836_v35, %v836_v35  ;;  %v890_v59 = vmul.f32 (!%p1067_p11), %v837_v36, %v837_v36 }
 0x166   : > { %820 = vst [vmem:[#allocation2 + $0x50] sm:$0xff] %v804_v60  ;;  %v771_v63 = vadd.f32 %v1235_v18, %v1141_v61  ;;  %v1142_v0 = vpop.f32.mrb[24].mxu0 }
 0x167   : > { %v1143_v1 = vpop.f32.mrb[25].mxu0 }
 0x168   : > { %v805_v2 = vadd.f32 %v771_v63, %v403_v62  ;;  %v1144_v3 = vadd.f32 %v1143_v1, %v1142_v0 }
 0x169   : > { %v839_v41 = vld [vmem:[#allocation2 + $0x48] sm:$0xff] (!%p1067_p11) }
 0x16a   : > { %821 = vst [vmem:[#allocation2 + $0x58] sm:$0xff] %v805_v2  ;;  %v776_v5 = vadd.f32 %v1144_v3, %v775_v29  ;;  %v1145_v6 = vpop.f32.mrb[26].mxu0  ;;  %855 = vst [vmem:[%s1730_s2 + $0x48] sm:$0xff] (!%p1067_p11), %v839_v41  ;;  %v892_v1 = vmul.f32 (!%p1067_p11), %v839_v41, %v839_v41 }
 0x16b   : > { %v1146_v7 = vpop.f32.mrb[27].mxu0 }
 0x16c   : > { %v806_v8 = vadd.f32 %v776_v5, %v404_v4  ;;  %v1147_v9 = vadd.f32 %v1146_v7, %v1145_v6 }
 0x16d   : > { %v840_v42 = vld [vmem:[#allocation2 + $0x50] sm:$0xff] (!%p1067_p11) }
 0x16e   : > { %822 = vst [vmem:[#allocation2 + $0x60] sm:$0xff] %v806_v8  ;;  %v781_v11 = vadd.f32 %v1238_v26, %v1147_v9  ;;  %v1148_v12 = vpop.f32.mrb[28].mxu0  ;;  %v831_v26 = vld [vmem:[#allocation2 + $0x8] sm:$0xff] (!%p1067_p11)  ;;  %856 = vst [vmem:[%s1730_s2 + $0x50] sm:$0xff] (!%p1067_p11), %v840_v42  ;;  %v893_v4 = vmul.f32 (!%p1067_p11), %v840_v42, %v840_v42 }
 0x16f   : > { %v1149_v13 = vpop.f32.mrb[29].mxu0  ;;  %847 = vst [vmem:[%s1730_s2 + $0x8] sm:$0xff] (!%p1067_p11), %v831_v26  ;;  %v862_v29 = vadd.f32 (!%p1067_p11), %v831_v26, %v830_v25  ;;  %v884_v30 = vmul.f32 (!%p1067_p11), %v831_v26, %v831_v26 }
 0x170   : > { %v807_v14 = vadd.f32 %v781_v11, %v405_v10  ;;  %v1150_v15 = vadd.f32 %v1149_v13, %v1148_v12 }
 0x171   : > { %v899_v38 = vadd.f32 (!%p1067_p11), %v884_v30, %v883_v28  ;;  %v863_v39 = vadd.f32 (!%p1067_p11), %v862_v29, %v832_v27  ;;  %v841_v43 = vld [vmem:[#allocation2 + $0x58] sm:$0xff] (!%p1067_p11) }
 0x172   : > { %823 = vst [vmem:[#allocation2 + $0x68] sm:$0xff] %v807_v14  ;;  %v786_v17 = vadd.f32 %v1150_v15, %v785_v37  ;;  %v1151_v18 = vpop.f32.mrb[30].mxu0  ;;  %v838_v37 = vld [vmem:[#allocation2 + $0x40] sm:$0xff] (!%p1067_p11)  ;;  %857 = vst [vmem:[%s1730_s2 + $0x58] sm:$0xff] (!%p1067_p11), %v841_v43  ;;  %v894_v7 = vmul.f32 (!%p1067_p11), %v841_v43, %v841_v43 }
 0x173   : > { %v1152_v19 = vpop.f32.mrb[31].mxu0  ;;  %854 = vst [vmem:[%s1730_s2 + $0x40] sm:$0xff] (!%p1067_p11), %v838_v37  ;;  %v900_v47 = vadd.f32 (!%p1067_p11), %v899_v38, %v885_v31  ;;  %v864_v48 = vadd.f32 (!%p1067_p11), %v863_v39, %v833_v32  ;;  %v891_v62 = vmul.f32 (!%p1067_p11), %v838_v37, %v838_v37 }
 0x174   : > { %v808_v20 = vadd.f32 %v786_v17, %v406_v16  ;;  %v1153_v21 = vadd.f32 %v1152_v19, %v1151_v18  ;;  %829 = sbr.rel (%p1067_p11) target bundleno = 413 (0x19d), region = 59 }
 0x175   : > { %v842_v44 = vld [vmem:[#allocation2 + $0x60] sm:$0xff] (!%p1067_p11)  ;;  %v901_v51 = vadd.f32 (!%p1067_p11), %v900_v47, %v886_v40  ;;  %v865_v52 = vadd.f32 (!%p1067_p11), %v864_v48, %v834_v33 }
 0x176   : > { %824 = vst [vmem:[#allocation2 + $0x70] sm:$0xff] %v808_v20  ;;  %v791_v23 = vadd.f32 %v1241_v34, %v1153_v21  ;;  %v835_v34 = vld [vmem:[#allocation2 + $0x28] sm:$0xff] (!%p1067_p11)  ;;  %858 = vst [vmem:[%s1730_s2 + $0x60] sm:$0xff] (!%p1067_p11), %v842_v44  ;;  %v895_v10 = vmul.f32 (!%p1067_p11), %v842_v44, %v842_v44 }
 0x177   : > { %851 = vst [vmem:[%s1730_s2 + $0x28] sm:$0xff] (!%p1067_p11), %v835_v34  ;;  %v888_v53 = vmul.f32 (!%p1067_p11), %v835_v34, %v835_v34  ;;  %v902_v54 = vadd.f32 (!%p1067_p11), %v901_v51, %v887_v49  ;;  %v866_v55 = vadd.f32 (!%p1067_p11), %v865_v52, %v835_v34 }
 0x178   : > { %v809_v24 = vadd.f32 %v791_v23, %v407_v22 }
 0x179   : > { %v843_v45 = vld [vmem:[#allocation2 + $0x68] sm:$0xff] (!%p1067_p11)  ;;  %v903_v57 = vadd.f32 (!%p1067_p11), %v902_v54, %v888_v53  ;;  %v867_v58 = vadd.f32 (!%p1067_p11), %v866_v55, %v836_v35 }
 0x17a   : > { %825 = vst [vmem:[#allocation2 + $0x78] sm:$0xff] %v809_v24  ;;  %859 = vst [vmem:[%s1730_s2 + $0x68] sm:$0xff] (!%p1067_p11), %v843_v45  ;;  %v896_v13 = vmul.f32 (!%p1067_p11), %v843_v45, %v843_v45 }
 0x17b   : > { %v904_v60 = vadd.f32 %v903_v57, %v889_v56  ;;  %v868_v61 = vadd.f32 %v867_v58, %v837_v36 }
 0x17d   : > { %v844_v46 = vld [vmem:[#allocation2 + $0x70] sm:$0xff]  ;;  %v905_v63 = vadd.f32 %v904_v60, %v890_v59  ;;  %v869_v0 = vadd.f32 %v868_v61, %v838_v37 }
 0x17e   : > { %860 = vst [vmem:[%s1730_s2 + $0x70] sm:$0xff] %v844_v46  ;;  %v897_v16 = vmul.f32 %v844_v46, %v844_v46 }
 0x17f   : > { %v906_v2 = vadd.f32 %v905_v63, %v891_v62  ;;  %v870_v3 = vadd.f32 %v869_v0, %v839_v41 }
 0x181   : > { %v845_v50 = vld [vmem:[#allocation2 + $0x78] sm:$0xff]  ;;  %v907_v5 = vadd.f32 %v906_v2, %v892_v1  ;;  %v871_v6 = vadd.f32 %v870_v3, %v840_v42 }
 0x182   : > { %861 = vst [vmem:[%s1730_s2 + $0x78] sm:$0xff] %v845_v50  ;;  %v898_v19 = vmul.f32 %v845_v50, %v845_v50 }
 0x183   : > { %v908_v8 = vadd.f32 %v907_v5, %v893_v4  ;;  %v872_v9 = vadd.f32 %v871_v6, %v841_v43 }
 0x185   : > { %v909_v11 = vadd.f32 %v908_v8, %v894_v7  ;;  %v873_v12 = vadd.f32 %v872_v9, %v842_v44 }
 0x187   : > { %v910_v14 = vadd.f32 %v909_v11, %v895_v10  ;;  %v874_v15 = vadd.f32 %v873_v12, %v843_v45 }
 0x189   : > { %v911_v17 = vadd.f32 %v910_v14, %v896_v13  ;;  %v875_v18 = vadd.f32 %v874_v15, %v844_v46 }
 0x18b   : > { %v912_v20 = vadd.f32 %v911_v17, %v897_v16  ;;  %v876_v21 = vadd.f32 %v875_v18, %v845_v50 }
 0x18d   : > { %v877_v22 = vrot.slane %v876_v21, 4  ;;  %v913_v23 = vadd.f32 %v912_v20, %v898_v19 }
 0x18f   : > { %v878_v24 = vadd.f32 %v877_v22, %v876_v21  ;;  %v914_v25 = vrot.slane %v913_v23, 4 }
 0x191   : > { %v879_v26 = vrot.slane %v878_v24, 2  ;;  %v915_v27 = vadd.f32 %v914_v25, %v913_v23 }
 0x193   : > { %v880_v28 = vadd.f32 %v879_v26, %v878_v24  ;;  %v916_v29 = vrot.slane %v915_v27, 2 }
 0x195   : > { %v881_v30 = vrot.slane %v880_v28, 1  ;;  %v917_v31 = vadd.f32 %v916_v29, %v915_v27 }
 0x197   : > { %v882_v32 = vadd.f32 %v881_v30, %v880_v28  ;;  %v918_v33 = vrot.slane %v917_v31, 1 }
 0x199   : > { %v919_v34 = vadd.f32 %v918_v33, %v917_v31 }
 0x19b   : > { %v921_v35 = vsel %vm920_vm0, %v882_v32, %v919_v34 }
 0x19c   : > { %922 = vst [vmem:[%s1731_s3] sm:$0x3] %v921_v35 }
 0x19d PF: > { %s14_s16 = sadd.s32 1, %s1387_s16   ;;  %s1732_s12 = smov %s1375_s13 }
 0x19e   : > { %p11_p12 = scmp.ge.s32.totalorder %s14_s16, 5   ;;  %s1733_s13 = smov %s1445_s20 }
 0x19f   : > { %s1734_s14 = smov %s1383_s15  ;;  %s1735_s15 = smov %s1737_s17 }
 0x1a0   :  { %13 = sbr.rel (!%p11_p12) target bundleno = 3 (0x3), region = 109 }

// kernel: _lambda_.13
= control target key start
LH: loop header
LB: loop body
LE: loop exit
PB: predicated region body
PF: predicated region fallthrough
CT: control target
= control target key end

     0   :  { %s466_s0 = inlined_call_operand.vmem [shape: f32[128,128], index: 0, kind: input, shape index: {}]   ;;  %s467_s1 = inlined_call_operand.vmem [shape: f32[1,128], index: 1, kind: input, shape index: {}]   ;;  %s468_s2 = inlined_call_operand.vmem [shape: f32[1,128], index: 2, kind: input, shape index: {}]   ;;  %s469_s3 = inlined_call_operand.vmem [shape: f32[128,128], index: 3, kind: input, shape index: {}]   ;;  %s470_s4 = inlined_call_operand.vmem [shape: f32[1,128], index: 4, kind: input, shape index: {}]   ;;  %s471_s5 = inlined_call_operand.vmem [shape: f32[1,128], index: 5, kind: input, shape index: {}]   ;;  %s472_s6 = inlined_call_operand.vmem [shape: f32[128,128], index: 6, kind: output, shape index: {}]  }
   0x1   :  { %v23_v0 = vld [vmem:[%s466_s0] sm:$0xff]  ;;  %v24_v8 = vld [vmem:[%s466_s0 + $0x8] sm:$0xff]  ;;  %v25_v10 = vld [vmem:[%s466_s0 + $0x10] sm:$0xff] }
   0x2   :  { %v244_v1 = vld [vmem:[%s467_s1] ss:$0 sm:$0xff]  ;;  %v86_v9 = vld [vmem:[%s469_s3 + $0x8] sm:$0xff]  ;;  %v87_v15 = vld [vmem:[%s469_s3 + $0x10] sm:$0xff] }
   0x3   :  { %v249_v2 = vld [vmem:[%s468_s2] ss:$0 sm:$0xff]  ;;  %v46_v3 = vmul.f32 %v244_v1, %v23_v0  ;;  %v47_v12 = vmul.f32 %v244_v1, %v24_v8  ;;  %v48_v14 = vmul.f32 %v244_v1, %v25_v10  ;;  %v26_v16 = vld [vmem:[%s466_s0 + $0x18] sm:$0xff]  ;;  %v28_v24 = vld [vmem:[%s466_s0 + $0x28] sm:$0xff] }
   0x4   :  { %v85_v4 = vld [vmem:[%s469_s3] sm:$0xff]  ;;  %v88_v17 = vld [vmem:[%s469_s3 + $0x18] sm:$0xff]  ;;  %v49_v20 = vmul.f32 %v244_v1, %v26_v16  ;;  %v90_v29 = vld [vmem:[%s469_s3 + $0x28] sm:$0xff]  ;;  %v51_v38 = vmul.f32 %v244_v1, %v28_v24 }
   0x5   :  { %v258_v5 = vld [vmem:[%s470_s4] ss:$0 sm:$0xff]  ;;  %v69_v11 = vadd.f32 %v249_v2, %v46_v3  ;;  %v70_v25 = vadd.f32 %v249_v2, %v47_v12  ;;  %v71_v27 = vadd.f32 %v249_v2, %v48_v14  ;;  %v29_v34 = vld [vmem:[%s466_s0 + $0x30] sm:$0xff]  ;;  %v30_v44 = vld [vmem:[%s466_s0 + $0x38] sm:$0xff] }
   0x6   :  { %v263_v6 = vld [vmem:[%s471_s5] ss:$0 sm:$0xff]  ;;  %v108_v7 = vmul.f32 %v258_v5, %v85_v4  ;;  %v109_v13 = vmul.f32 %v258_v5, %v86_v9  ;;  %v110_v19 = vmul.f32 %v258_v5, %v87_v15  ;;  %v111_v21 = vmul.f32 %v258_v5, %v88_v17  ;;  %v91_v39 = vld [vmem:[%s469_s3 + $0x30] sm:$0xff]  ;;  %v92_v45 = vld [vmem:[%s469_s3 + $0x38] sm:$0xff] }
   0x7   :  { %v27_v22 = vld [vmem:[%s466_s0 + $0x20] sm:$0xff]  ;;  %v72_v32 = vadd.f32 %v249_v2, %v49_v20  ;;  %v113_v43 = vmul.f32 %v258_v5, %v90_v29  ;;  %v74_v48 = vadd.f32 %v249_v2, %v51_v38  ;;  %v52_v49 = vmul.f32 %v244_v1, %v29_v34  ;;  %v32_v56 = vld [vmem:[%s466_s0 + $0x48] sm:$0xff]  ;;  %v33_v4 = vld [vmem:[%s466_s0 + $0x50] sm:$0xff] }
   0x8   :  { %v131_v18 = vadd.f32 %v263_v6, %v108_v7  ;;  %v89_v23 = vld [vmem:[%s469_s3 + $0x20] sm:$0xff]  ;;  %v132_v26 = vadd.f32 %v263_v6, %v109_v13  ;;  %v50_v28 = vmul.f32 %v244_v1, %v27_v22  ;;  %v133_v31 = vadd.f32 %v263_v6, %v110_v19  ;;  %v94_v3 = vld [vmem:[%s469_s3 + $0x48] sm:$0xff]  ;;  %v34_v12 = vld [vmem:[%s466_s0 + $0x58] sm:$0xff] }
   0x9   :  { %v134_v33 = vadd.f32 %v263_v6, %v111_v21  ;;  %v112_v37 = vmul.f32 %v258_v5, %v89_v23  ;;  %v31_v50 = vld [vmem:[%s466_s0 + $0x40] sm:$0xff]  ;;  %v136_v54 = vadd.f32 %v263_v6, %v113_v43  ;;  %v114_v55 = vmul.f32 %v258_v5, %v91_v39  ;;  %v96_v17 = vld [vmem:[%s469_s3 + $0x58] sm:$0xff]  ;;  %v37_v34 = vld [vmem:[%s466_s0 + $0x70] sm:$0xff] }
   0xa   :  { %v147_v30 = vadd.f32 %v131_v18, %v69_v11  ;;  %v148_v35 = vadd.f32 %v132_v26, %v70_v25  ;;  %v73_v36 = vadd.f32 %v249_v2, %v50_v28  ;;  %v149_v41 = vadd.f32 %v133_v31, %v71_v27  ;;  %v93_v51 = vld [vmem:[%s469_s3 + $0x40] sm:$0xff]  ;;  %v95_v11 = vld [vmem:[%s469_s3 + $0x50] sm:$0xff]  ;;  %v36_v28 = vld [vmem:[%s466_s0 + $0x68] sm:$0xff] }
   0xb   :  { %v150_v42 = vadd.f32 %v134_v33, %v72_v32  ;;  %v135_v47 = vadd.f32 %v263_v6, %v112_v37  ;;  %v75_v58 = vadd.f32 %v249_v2, %v52_v49  ;;  %v53_v59 = vmul.f32 %v244_v1, %v30_v44  ;;  %v35_v22 = vld [vmem:[%s466_s0 + $0x60] sm:$0xff]  ;;  %v98_v33 = vld [vmem:[%s469_s3 + $0x68] sm:$0xff]  ;;  %v99_v43 = vld [vmem:[%s469_s3 + $0x70] sm:$0xff] }
   0xc   :  { %v163_v40 = vmax.f32 %v147_v30, 0.0  ;;  %v164_v46 = vmax.f32 %v148_v35, 0.0  ;;  %v165_v52 = vmax.f32 %v149_v41, 0.0  ;;  %v115_v60 = vmul.f32 %v258_v5, %v92_v45  ;;  %v97_v27 = vld [vmem:[%s469_s3 + $0x60] sm:$0xff]  ;;  %v100_v49 = vld [vmem:[%s469_s3 + $0x78] sm:$0xff] }
   0xd   :  { %v166_v53 = vmax.f32 %v150_v42, 0.0  ;;  %v151_v57 = vadd.f32 %v135_v47, %v73_v36  ;;  %v152_v61 = vadd.f32 %v136_v54, %v74_v48  ;;  %v137_v62 = vadd.f32 %v263_v6, %v114_v55  ;;  %v38_v48 = vld [vmem:[%s466_s0 + $0x78] sm:$0xff] }
   0xe   :  { %179 = vst [vmem:[%s472_s6] sm:$0xff] %v163_v40  ;;  %180 = vst [vmem:[%s472_s6 + $0x8] sm:$0xff] %v164_v46  ;;  %v54_v63 = vmul.f32 %v244_v1, %v31_v50  ;;  %v116_v0 = vmul.f32 %v258_v5, %v93_v51  ;;  %v76_v8 = vadd.f32 %v249_v2, %v53_v59 }
   0xf   :  { %181 = vst [vmem:[%s472_s6 + $0x10] sm:$0xff] %v165_v52  ;;  %182 = vst [vmem:[%s472_s6 + $0x18] sm:$0xff] %v166_v53  ;;  %v167_v7 = vmax.f32 %v151_v57, 0.0  ;;  %v138_v9 = vadd.f32 %v263_v6, %v115_v60  ;;  %v55_v10 = vmul.f32 %v244_v1, %v32_v56  ;;  %v168_v13 = vmax.f32 %v152_v61, 0.0 }
  0x10   :  { %v153_v14 = vadd.f32 %v137_v62, %v75_v58  ;;  %v77_v15 = vadd.f32 %v249_v2, %v54_v63  ;;  %v139_v16 = vadd.f32 %v263_v6, %v116_v0  ;;  %v117_v20 = vmul.f32 %v258_v5, %v94_v3 }
  0x11   :  { %183 = vst [vmem:[%s472_s6 + $0x20] sm:$0xff] %v167_v7  ;;  %v154_v18 = vadd.f32 %v138_v9, %v76_v8  ;;  %v78_v19 = vadd.f32 %v249_v2, %v55_v10  ;;  %v56_v21 = vmul.f32 %v244_v1, %v33_v4  ;;  %184 = vst [vmem:[%s472_s6 + $0x28] sm:$0xff] %v168_v13 }
  0x12   :  { %v169_v23 = vmax.f32 %v153_v14, 0.0  ;;  %v155_v24 = vadd.f32 %v139_v16, %v77_v15  ;;  %v118_v25 = vmul.f32 %v258_v5, %v95_v11  ;;  %v57_v26 = vmul.f32 %v244_v1, %v34_v12 }
  0x13   :  { %v170_v29 = vmax.f32 %v154_v18, 0.0  ;;  %v140_v30 = vadd.f32 %v263_v6, %v117_v20  ;;  %v79_v31 = vadd.f32 %v249_v2, %v56_v21  ;;  %v119_v32 = vmul.f32 %v258_v5, %v96_v17 }
  0x14   :  { %185 = vst [vmem:[%s472_s6 + $0x30] sm:$0xff] %v169_v23  ;;  %v171_v35 = vmax.f32 %v155_v24, 0.0  ;;  %v141_v36 = vadd.f32 %v263_v6, %v118_v25  ;;  %v80_v37 = vadd.f32 %v249_v2, %v57_v26  ;;  %v58_v38 = vmul.f32 %v244_v1, %v35_v22 }
  0x15   :  { %186 = vst [vmem:[%s472_s6 + $0x38] sm:$0xff] %v170_v29  ;;  %v156_v39 = vadd.f32 %v140_v30, %v78_v19  ;;  %v142_v40 = vadd.f32 %v263_v6, %v119_v32  ;;  %v120_v41 = vmul.f32 %v258_v5, %v97_v27  ;;  %v59_v42 = vmul.f32 %v244_v1, %v36_v28 }
  0x16   :  { %187 = vst [vmem:[%s472_s6 + $0x40] sm:$0xff] %v171_v35  ;;  %v157_v44 = vadd.f32 %v141_v36, %v79_v31  ;;  %v81_v45 = vadd.f32 %v249_v2, %v58_v38  ;;  %v121_v46 = vmul.f32 %v258_v5, %v98_v33  ;;  %v60_v47 = vmul.f32 %v244_v1, %v37_v34 }
  0x17   :  { %v172_v50 = vmax.f32 %v156_v39, 0.0  ;;  %v158_v51 = vadd.f32 %v142_v40, %v80_v37  ;;  %v143_v52 = vadd.f32 %v263_v6, %v120_v41  ;;  %v82_v53 = vadd.f32 %v249_v2, %v59_v42 }
  0x18   :  { %v173_v54 = vmax.f32 %v157_v44, 0.0  ;;  %v144_v55 = vadd.f32 %v263_v6, %v121_v46  ;;  %v83_v56 = vadd.f32 %v249_v2, %v60_v47  ;;  %v122_v57 = vmul.f32 %v258_v5, %v99_v43 }
  0x19   :  { %188 = vst [vmem:[%s472_s6 + $0x48] sm:$0xff] %v172_v50  ;;  %v174_v58 = vmax.f32 %v158_v51, 0.0  ;;  %v159_v59 = vadd.f32 %v143_v52, %v81_v45  ;;  %v61_v60 = vmul.f32 %v244_v1, %v38_v48  ;;  %v123_v61 = vmul.f32 %v258_v5, %v100_v49 }
  0x1a   :  { %189 = vst [vmem:[%s472_s6 + $0x50] sm:$0xff] %v173_v54  ;;  %v160_v62 = vadd.f32 %v144_v55, %v82_v53  ;;  %v145_v63 = vadd.f32 %v263_v6, %v122_v57 }
  0x1b   :  { %190 = vst [vmem:[%s472_s6 + $0x58] sm:$0xff] %v174_v58  ;;  %v175_v0 = vmax.f32 %v159_v59, 0.0  ;;  %v84_v3 = vadd.f32 %v249_v2, %v61_v60  ;;  %v146_v4 = vadd.f32 %v263_v6, %v123_v61 }
  0x1c   :  { %v176_v7 = vmax.f32 %v160_v62, 0.0  ;;  %v161_v1 = vadd.f32 %v145_v63, %v83_v56 }
  0x1d   :  { %191 = vst [vmem:[%s472_s6 + $0x60] sm:$0xff] %v175_v0  ;;  %v162_v5 = vadd.f32 %v146_v4, %v84_v3 }
  0x1e   :  { %192 = vst [vmem:[%s472_s6 + $0x68] sm:$0xff] %v176_v7  ;;  %v177_v8 = vmax.f32 %v161_v1, 0.0 }
  0x1f   :  { %v178_v9 = vmax.f32 %v162_v5, 0.0 }
  0x20   :  { %193 = vst [vmem:[%s472_s6 + $0x70] sm:$0xff] %v177_v8 }
  0x21   :  { %194 = vst [vmem:[%s472_s6 + $0x78] sm:$0xff] %v178_v9 }

// kernel: _lambda_.17
= control target key start
LH: loop header
LB: loop body
LE: loop exit
PB: predicated region body
PF: predicated region fallthrough
CT: control target
= control target key end

     0   :  { %s473_s0 = inlined_call_operand.vmem [shape: f32[128,128], index: 0, kind: input, shape index: {}]   ;;  %s474_s1 = inlined_call_operand.vmem [shape: f32[1,128], index: 1, kind: input, shape index: {}]   ;;  %s475_s2 = inlined_call_operand.vmem [shape: f32[1,128], index: 2, kind: input, shape index: {}]   ;;  %s476_s3 = inlined_call_operand.vmem [shape: f32[128,128], index: 3, kind: input, shape index: {}]   ;;  %s477_s4 = inlined_call_operand.vmem [shape: f32[1,128], index: 4, kind: input, shape index: {}]   ;;  %s478_s5 = inlined_call_operand.vmem [shape: f32[1,128], index: 5, kind: input, shape index: {}]   ;;  %s479_s6 = inlined_call_operand.hbm [shape: f32[128,128], index: 6, kind: output, shape index: {}]  }
   0x1   :  { %v24_v0 = vld [vmem:[%s473_s0] sm:$0xff]  ;;  %v25_v8 = vld [vmem:[%s473_s0 + $0x8] sm:$0xff]  ;;  %v26_v10 = vld [vmem:[%s473_s0 + $0x10] sm:$0xff] }
   0x2   :  { %v287_v1 = vld [vmem:[%s474_s1] ss:$0 sm:$0xff]  ;;  %v87_v9 = vld [vmem:[%s476_s3 + $0x8] sm:$0xff]  ;;  %v88_v15 = vld [vmem:[%s476_s3 + $0x10] sm:$0xff] }
   0x3   :  { %v292_v2 = vld [vmem:[%s475_s2] ss:$0 sm:$0xff]  ;;  %v47_v3 = vmul.f32 %v287_v1, %v24_v0  ;;  %v48_v12 = vmul.f32 %v287_v1, %v25_v8  ;;  %v49_v14 = vmul.f32 %v287_v1, %v26_v10  ;;  %v27_v16 = vld [vmem:[%s473_s0 + $0x18] sm:$0xff]  ;;  %v29_v24 = vld [vmem:[%s473_s0 + $0x28] sm:$0xff] }
   0x4   :  { %v86_v4 = vld [vmem:[%s476_s3] sm:$0xff]  ;;  %v89_v17 = vld [vmem:[%s476_s3 + $0x18] sm:$0xff]  ;;  %v50_v20 = vmul.f32 %v287_v1, %v27_v16  ;;  %v91_v29 = vld [vmem:[%s476_s3 + $0x28] sm:$0xff]  ;;  %v52_v38 = vmul.f32 %v287_v1, %v29_v24 }
   0x5   :  { %v301_v5 = vld [vmem:[%s477_s4] ss:$0 sm:$0xff]  ;;  %v70_v11 = vadd.f32 %v292_v2, %v47_v3  ;;  %v71_v25 = vadd.f32 %v292_v2, %v48_v12  ;;  %v72_v27 = vadd.f32 %v292_v2, %v49_v14  ;;  %v30_v34 = vld [vmem:[%s473_s0 + $0x30] sm:$0xff]  ;;  %v31_v44 = vld [vmem:[%s473_s0 + $0x38] sm:$0xff] }
   0x6   :  { %v306_v6 = vld [vmem:[%s478_s5] ss:$0 sm:$0xff]  ;;  %v109_v7 = vmul.f32 %v301_v5, %v86_v4  ;;  %v110_v13 = vmul.f32 %v301_v5, %v87_v9  ;;  %v111_v19 = vmul.f32 %v301_v5, %v88_v15  ;;  %v112_v21 = vmul.f32 %v301_v5, %v89_v17  ;;  %v92_v39 = vld [vmem:[%s476_s3 + $0x30] sm:$0xff]  ;;  %v93_v45 = vld [vmem:[%s476_s3 + $0x38] sm:$0xff] }
   0x7   :  { %v28_v22 = vld [vmem:[%s473_s0 + $0x20] sm:$0xff]  ;;  %v73_v32 = vadd.f32 %v292_v2, %v50_v20  ;;  %v114_v43 = vmul.f32 %v301_v5, %v91_v29  ;;  %v75_v48 = vadd.f32 %v292_v2, %v52_v38  ;;  %v53_v49 = vmul.f32 %v287_v1, %v30_v34  ;;  %v33_v56 = vld [vmem:[%s473_s0 + $0x48] sm:$0xff]  ;;  %v34_v4 = vld [vmem:[%s473_s0 + $0x50] sm:$0xff] }
   0x8   :  { %v132_v18 = vadd.f32 %v306_v6, %v109_v7  ;;  %v90_v23 = vld [vmem:[%s476_s3 + $0x20] sm:$0xff]  ;;  %v133_v26 = vadd.f32 %v306_v6, %v110_v13  ;;  %v51_v28 = vmul.f32 %v287_v1, %v28_v22  ;;  %v134_v31 = vadd.f32 %v306_v6, %v111_v19  ;;  %v95_v3 = vld [vmem:[%s476_s3 + $0x48] sm:$0xff] }
   0x9   :  { %v135_v33 = vadd.f32 %v306_v6, %v112_v21  ;;  %v113_v37 = vmul.f32 %v301_v5, %v90_v23  ;;  %v32_v50 = vld [vmem:[%s473_s0 + $0x40] sm:$0xff]  ;;  %v137_v54 = vadd.f32 %v306_v6, %v114_v43  ;;  %v115_v55 = vmul.f32 %v301_v5, %v92_v39 }
   0xa   :  { %v148_v30 = vadd.f32 %v132_v18, %v70_v11  ;;  %v149_v35 = vadd.f32 %v133_v26, %v71_v25  ;;  %v74_v36 = vadd.f32 %v292_v2, %v51_v28  ;;  %v150_v41 = vadd.f32 %v134_v31, %v72_v27  ;;  %v94_v51 = vld [vmem:[%s476_s3 + $0x40] sm:$0xff] }
   0xb   :  { %v151_v42 = vadd.f32 %v135_v33, %v73_v32  ;;  %v136_v47 = vadd.f32 %v306_v6, %v113_v37  ;;  %v76_v58 = vadd.f32 %v292_v2, %v53_v49  ;;  %v54_v59 = vmul.f32 %v287_v1, %v31_v44 }
   0xc   :  { %v164_v40 = vmax.f32 %v148_v30, 0.0  ;;  %v165_v46 = vmax.f32 %v149_v35, 0.0  ;;  %v166_v52 = vmax.f32 %v150_v41, 0.0  ;;  %v116_v60 = vmul.f32 %v301_v5, %v93_v45 }
   0xd   :  { %v167_v53 = vmax.f32 %v151_v42, 0.0  ;;  %v152_v57 = vadd.f32 %v136_v47, %v74_v36  ;;  %v153_v61 = vadd.f32 %v137_v54, %v75_v48  ;;  %v138_v62 = vadd.f32 %v306_v6, %v115_v55 }
   0xe   :  { %180 = vst [vmem:[#allocation2] sm:$0xff] %v164_v40  ;;  %181 = vst [vmem:[#allocation2 + $0x8] sm:$0xff] %v165_v46  ;;  %v55_v63 = vmul.f32 %v287_v1, %v32_v50  ;;  %v117_v0 = vmul.f32 %v301_v5, %v94_v51 }
   0xf   :  { %182 = vst [vmem:[#allocation2 + $0x10] sm:$0xff] %v166_v52  ;;  %183 = vst [vmem:[#allocation2 + $0x18] sm:$0xff] %v167_v53 }
  0x10   :  { %11 = vsyncpa [#allocation3], 0  ;;  %v168_v7 = vmax.f32 %v152_v57, 0.0  ;;  %v77_v8 = vadd.f32 %v292_v2, %v54_v59  ;;  %v139_v9 = vadd.f32 %v306_v6, %v116_v60  ;;  %v56_v10 = vmul.f32 %v287_v1, %v33_v56  ;;  %v96_v11 = vld [vmem:[%s476_s3 + $0x50] sm:$0xff]  ;;  %v35_v12 = vld [vmem:[%s473_s0 + $0x58] sm:$0xff] }
  0x11   :  { %v169_v13 = vmax.f32 %v153_v61, 0.0  ;;  %v154_v14 = vadd.f32 %v138_v62, %v76_v58  ;;  %v78_v15 = vadd.f32 %v292_v2, %v55_v63  ;;  %v140_v16 = vadd.f32 %v306_v6, %v117_v0  ;;  %v97_v17 = vld [vmem:[%s476_s3 + $0x58] sm:$0xff]  ;;  %v36_v22 = vld [vmem:[%s473_s0 + $0x60] sm:$0xff]  ;;  %v37_v28 = vld [vmem:[%s473_s0 + $0x68] sm:$0xff] }
  0x12   :  { %184 = vst [vmem:[#allocation2 + $0x20] sm:$0xff] %v168_v7  ;;  %v155_v18 = vadd.f32 %v139_v9, %v77_v8  ;;  %v79_v19 = vadd.f32 %v292_v2, %v56_v10  ;;  %v118_v20 = vmul.f32 %v301_v5, %v95_v3  ;;  %v57_v21 = vmul.f32 %v287_v1, %v34_v4  ;;  %v98_v27 = vld [vmem:[%s476_s3 + $0x60] sm:$0xff]  ;;  %v99_v33 = vld [vmem:[%s476_s3 + $0x68] sm:$0xff]  ;;  %v38_v34 = vld [vmem:[%s473_s0 + $0x70] sm:$0xff] }
  0x13   :  { %185 = vst [vmem:[#allocation2 + $0x28] sm:$0xff] %v169_v13  ;;  %v170_v23 = vmax.f32 %v154_v14, 0.0  ;;  %v156_v24 = vadd.f32 %v140_v16, %v78_v15  ;;  %v119_v25 = vmul.f32 %v301_v5, %v96_v11  ;;  %v58_v26 = vmul.f32 %v287_v1, %v35_v12  ;;  %v100_v43 = vld [vmem:[%s476_s3 + $0x70] sm:$0xff]  ;;  %v39_v48 = vld [vmem:[%s473_s0 + $0x78] sm:$0xff]  ;;  %s243_s0 = smov [#allocation2]  }
  0x14   :  { %v171_v29 = vmax.f32 %v155_v18, 0.0  ;;  %v141_v30 = vadd.f32 %v306_v6, %v118_v20  ;;  %v80_v31 = vadd.f32 %v292_v2, %v57_v21  ;;  %v120_v32 = vmul.f32 %v301_v5, %v97_v17  ;;  %v101_v49 = vld [vmem:[%s476_s3 + $0x78] sm:$0xff]  ;;  %s201_s3 = sshll.u32 %s243_s0, 4  ;;  %s202_s3 = int_to_ptr.vmem [resolvable:$true] %s201_s3 }
  0x15   :  { %186 = vst [vmem:[#allocation2 + $0x30] sm:$0xff] %v170_v23  ;;  %v172_v35 = vmax.f32 %v156_v24, 0.0  ;;  %v142_v36 = vadd.f32 %v306_v6, %v119_v25  ;;  %v81_v37 = vadd.f32 %v292_v2, %v58_v26  ;;  %v59_v38 = vmul.f32 %v287_v1, %v36_v22  ;;  %s219_s11 = scalar_lea.vmem %s202_s3, 2048  ;;  %p224_p1 = scmp.lt.s32.totalorder %s202_s3, %s202_s3 }
  0x16   :  { %187 = vst [vmem:[#allocation2 + $0x38] sm:$0xff] %v171_v29  ;;  %v157_v39 = vadd.f32 %v141_v30, %v79_v19  ;;  %v143_v40 = vadd.f32 %v306_v6, %v120_v32  ;;  %v121_v41 = vmul.f32 %v301_v5, %v98_v27  ;;  %v60_v42 = vmul.f32 %v287_v1, %v37_v28  ;;  %p220_p0 = scmp.ne.s32.totalorder %s202_s3, %s219_s11  ;;  %p225_p2 = scmp.lt.s32.totalorder %s219_s11, %s219_s11 }
  0x17   :  { %188 = vst [vmem:[#allocation2 + $0x40] sm:$0xff] %v172_v35  ;;  %v158_v44 = vadd.f32 %v142_v36, %v80_v31  ;;  %v82_v45 = vadd.f32 %v292_v2, %v59_v38  ;;  %v122_v46 = vmul.f32 %v301_v5, %v99_v33  ;;  %v61_v47 = vmul.f32 %v287_v1, %v38_v34 }
  0x18   :  { %v173_v50 = vmax.f32 %v157_v39, 0.0  ;;  %v159_v51 = vadd.f32 %v143_v40, %v81_v37  ;;  %v144_v52 = vadd.f32 %v306_v6, %v121_v41  ;;  %v83_v53 = vadd.f32 %v292_v2, %v60_v42  ;;  %p226_p3 = por %p225_p2, %p224_p1 }
  0x19   :  { %v174_v54 = vmax.f32 %v158_v44, 0.0  ;;  %v145_v55 = vadd.f32 %v306_v6, %v122_v46  ;;  %v84_v56 = vadd.f32 %v292_v2, %v61_v47  ;;  %v123_v57 = vmul.f32 %v301_v5, %v100_v43 }
  0x1a   :  { %189 = vst [vmem:[#allocation2 + $0x48] sm:$0xff] %v173_v50  ;;  %v175_v58 = vmax.f32 %v159_v51, 0.0  ;;  %v160_v59 = vadd.f32 %v144_v52, %v82_v45  ;;  %v62_v60 = vmul.f32 %v287_v1, %v39_v48  ;;  %v124_v61 = vmul.f32 %v301_v5, %v101_v49  ;;  %p227_p4 = pnand %p226_p3, %p220_p0 }
  0x1b   :  { %190 = vst [vmem:[#allocation2 + $0x50] sm:$0xff] %v174_v54  ;;  %v161_v62 = vadd.f32 %v145_v55, %v83_v53  ;;  %v146_v63 = vadd.f32 %v306_v6, %v123_v57 }
  0x1c   :  { %191 = vst [vmem:[#allocation2 + $0x58] sm:$0xff] %v175_v58  ;;  %v176_v0 = vmax.f32 %v160_v59, 0.0  ;;  %v85_v3 = vadd.f32 %v292_v2, %v62_v60  ;;  %v147_v4 = vadd.f32 %v306_v6, %v124_v61 }
  0x1d   :  { %v177_v7 = vmax.f32 %v161_v62, 0.0  ;;  %v162_v8 = vadd.f32 %v146_v63, %v84_v56 }
  0x1e   :  { %192 = vst [vmem:[#allocation2 + $0x60] sm:$0xff] %v176_v0  ;;  %v163_v9 = vadd.f32 %v147_v4, %v85_v3 }
  0x1f   :  { %193 = vst [vmem:[#allocation2 + $0x68] sm:$0xff] %v177_v7  ;;  %v178_v1 = vmax.f32 %v162_v8, 0.0 }
  0x20   :  { %v179_v5 = vmax.f32 %v163_v9, 0.0 }
  0x21   :  { %194 = vst [vmem:[#allocation2 + $0x70] sm:$0xff] %v178_v1 }
  0x22   :  { %195 = vst [vmem:[#allocation2 + $0x78] sm:$0xff] %v179_v5 }
  0x23   :  { %230 = shalt.err (!%p227_p4)
}
  0x24   :  { %s231_s5 = scalar_lea.hbm %s479_s6, 2048 }
  0x25   :  { %p232_p5 = scmp.ne.s32.totalorder %s479_s6, %s231_s5  ;;  %p235_p6 = scmp.lt.u32.totalorder %s231_s5, %s479_s6 }
  0x27   :  { %p237_p7 = pnand %p235_p6, %p232_p5 }
  0x29   :  { %240 = shalt.err (!%p237_p7)
}
  0x2a   :  { %s244_s17 = smov 128   ;;  %s245_s18 = smov 8  }
  0x2b   :  { %207 = dma.vmem_to_hbm [thread:$0]  %s202_s3, 2048, %s479_s6, [#allocation3], %s244_s17, %s244_s17, %s245_s18  }
  0x2c   :  { %241 = dma.done.wait [#allocation3], 2048  }
  0x2d   :  { %242 = vsyncadd [#allocation3], 4294965248 }
  0x2e   :  { %211 = vsyncpa [#allocation3], 1 }

</bundles_post_ra>
